<compile_context>
chip_gen: v5e
topology: v5e:2x2
jax: 0.10.0
libtpu: 0.0.40
codegen_flags: <defaults>
</compile_context>

<pallas_src>
import functools

import jax
import jax.numpy as jnp
import numpy as np
from jax import lax
from jax.experimental import pallas as pl
from jax.experimental.pallas import tpu as pltpu


def _residual_block_kernel(alpha_ref, wcode_ref, hcode_ref, x_ref,
                           w1_ref, b1_ref, w2_ref, b2_ref, o_ref, *, W):
    """One grid step = Bt images folded into the lane axis.

    x_ref   : (1, Cp, Np) f32, lane index = bt*H*W + h*W + w (+ lane tail pad)
    wcode   : (1, Np) int32: 0 interior, 1 if w==0, 2 if w==W-1 (precomputed)
    hcode   : (1, Np) int32: 0 interior, 1 if h==0, 2 if h==H-1 (precomputed)
    w*_ref  : (9, Cp, Cp) f32 tap-major weights: w[kh*3 + kw, o, i]
    b*_ref  : (Cp, 1) f32
    alpha   : (1,) f32 in SMEM (nn.PReLU() single shared parameter)
    """
    x = x_ref[0]                                       # (Cp, Np)
    n = x.shape[-1]

    # Border masks, built once per grid step and reused by both convs.
    wc = jnp.broadcast_to(wcode_ref[...], x.shape)     # cheap sublane broadcast
    hc = jnp.broadcast_to(hcode_ref[...], x.shape)
    m_w0 = wc == 1
    m_wL = wc == 2
    m_h0 = hc == 1
    m_hL = hc == 2

    def rolled(t, off):
        # rolled(t, off)[..., p] == t[..., (p + off) % n]   (XLU lane rotation)
        return pltpu.roll(t, (-off) % n, 1)

    def conv3x3(y, w_ref_, b_ref_):
        # ReflectionPad2d(1) + 3x3 conv, accumulated tap-by-tap (no im2col slab).
        y_m1 = rolled(y, -1)                           # value at (h, w-1)
        y_p1 = rolled(y, 1)                            # value at (h, w+1)
        y_w = {
            -1: jnp.where(m_w0, y_p1, y_m1),           # w==0   reflects to w==1
            0: y,
            1: jnp.where(m_wL, y_m1, y_p1),            # w==W-1 reflects to w==W-2
        }
        acc = jnp.broadcast_to(b_ref_[...], y.shape).astype(jnp.float32)
        for dw in (-1, 0, 1):
            t = y_w[dw]
            t_above = rolled(t, -W)                    # value at (h-1, w)
            t_below = rolled(t, W)                     # value at (h+1, w)
            taps = (
                (0, jnp.where(m_h0, t_below, t_above)),   # dh=-1: h==0 -> row 1
                (1, t),                                    # dh=0
                (2, jnp.where(m_hL, t_above, t_below)),   # dh=+1: h==H-1 -> row H-2
            )
            for kh, tap in taps:
                k = kh * 3 + (dw + 1)
                acc = acc + jnp.dot(w_ref_[k], tap,
                                    preferred_element_type=jnp.float32)
        return acc

    out = conv3x3(x, w1_ref, b1_ref)
    alpha = alpha_ref[0]
    out = jnp.where(out > 0, out, alpha * out)         # PReLU (shared alpha)
    out = conv3x3(out, w2_ref, b2_ref)
    o_ref[0] = (out * 0.1 + x).astype(o_ref.dtype)     # lane-dense store


def _round_up(x, m):
    return (x + m - 1) // m * m


def _pick_bt(B, HW, Cp):
    """How many images to fold into the lane axis per grid step (divides B)."""
    budget = 20 << 20                      # per-step f32 working-set target
    per_image = max(1, Cp * HW * 4 * 10)   # ~10 live (Cp, HW) f32 planes per image
    bt = max(1, min(B, budget // per_image))
    while B % bt:
        bt -= 1
    return bt


@jax.jit
def residual_block(x_nchw, w1_oihw, b1, w2_oihw, b2, alpha):
    """Matches PyTorch ResidualBlock.forward on NCHW input."""
    B, C, H, W = x_nchw.shape
    assert H >= 2 and W >= 2, "ReflectionPad2d(1) requires H, W >= 2"
    HW = H * W

    Cp = _round_up(max(C, 8), 8)           # f32 sublane multiple
    Bt = _pick_bt(B, HW, Cp)
    G = B // Bt
    N = Bt * HW
    Np = _round_up(N, 128)                 # lane-dense minor axis

    # Activations: NCHW -> (G, Cp, Np); lanes are image-major flat pixels.
    # (Pad lanes/channels are zero; rolls only reach the pad at masked border
    #  positions, so they never contaminate real outputs.)
    x_flat = x_nchw.reshape(B, C, HW).astype(jnp.float32)
    x_flat = jnp.pad(x_flat, ((0, 0), (0, Cp - C), (0, 0)))
    x_grp = x_flat.reshape(G, Bt, Cp, HW).transpose(0, 2, 1, 3).reshape(G, Cp, N)
    x_grp = jnp.pad(x_grp, ((0, 0), (0, 0), (0, Np - N)))

    # Weights: (C, C, 3, 3) -> tap-major (9, Cp, Cp); padded rows/cols are zero so
    # padded channels contribute nothing and produce zero outputs (sliced off below).
    def prep_w(w):
        w = jnp.pad(w.astype(jnp.float32),
                    ((0, Cp - C), (0, Cp - C), (0, 0), (0, 0)))
        return jnp.transpose(w, (2, 3, 0, 1)).reshape(9, Cp, Cp)

    def prep_b(b):
        return jnp.pad(b.astype(jnp.float32), (0, Cp - C)).reshape(Cp, 1)

    w1t, w2t = prep_w(w1_oihw), prep_w(w2_oihw)
    b1c, b2c = prep_b(b1), prep_b(b2)
    alpha_ = jnp.asarray(alpha, jnp.float32).reshape(1)

    # Reflection-border codes, hoisted out of the kernel (no int div on the VPU).
    pix = jnp.arange(Np, dtype=jnp.int32) % HW
    w_idx = pix % W
    h_idx = pix // W
    wcode = jnp.where(w_idx == 0, 1, jnp.where(w_idx == W - 1, 2, 0))
    hcode = jnp.where(h_idx == 0, 1, jnp.where(h_idx == H - 1, 2, 0))
    wcode = wcode.astype(jnp.int32).reshape(1, Np)
    hcode = hcode.astype(jnp.int32).reshape(1, Np)

    kernel = functools.partial(_residual_block_kernel, W=W)

    out_grp = pl.pallas_call(
        kernel,
        out_shape=jax.ShapeDtypeStruct((G, Cp, Np), jnp.float32),
        grid=(G,),
        in_specs=[
            pl.BlockSpec(memory_space=pltpu.MemorySpace.SMEM),     # alpha (scalar)
            pl.BlockSpec((1, Np), lambda g: (0, 0)),               # wcode
            pl.BlockSpec((1, Np), lambda g: (0, 0)),               # hcode
            pl.BlockSpec((1, Cp, Np), lambda g: (g, 0, 0)),        # x group
            pl.BlockSpec((9, Cp, Cp), lambda g: (0, 0, 0)),        # w1 taps
            pl.BlockSpec((Cp, 1), lambda g: (0, 0)),               # b1
            pl.BlockSpec((9, Cp, Cp), lambda g: (0, 0, 0)),        # w2 taps
            pl.BlockSpec((Cp, 1), lambda g: (0, 0)),               # b2
        ],
        out_specs=pl.BlockSpec((1, Cp, Np), lambda g: (g, 0, 0)),
        compiler_params=pltpu.CompilerParams(
            dimension_semantics=("parallel",),          # megacore over batch groups
            vmem_limit_bytes=48 << 20),                 # above 16/32 MiB scoped defaults
    )(alpha_, wcode, hcode, x_grp, w1t, b1c, w2t, b2c)

    # Un-fold lanes -> (B, C, H, W); drop channel / lane padding.
    out = out_grp[:, :, :N].reshape(G, Cp, Bt, HW).transpose(0, 2, 1, 3)
    out = out.reshape(B, Cp, HW)[:, :C, :].reshape(B, C, H, W)
    return out


def _reference(x, w1, b1, w2, b2, alpha):
    """Pure-JAX reference reproducing the PyTorch forward (NCHW)."""
    def conv(t, w, b):
        tp = jnp.pad(t, ((0, 0), (0, 0), (1, 1), (1, 1)), mode="reflect")
        y = lax.conv_general_dilated(
            tp, w, window_strides=(1, 1), padding="VALID",
            dimension_numbers=("NCHW", "OIHW", "NCHW"))
        return y + b[None, :, None, None]

    out = conv(x, w1, b1)
    out = jnp.where(out > 0, out, alpha * out)   # PReLU (single shared alpha)
    out = conv(out, w2, b2) * 0.1
    return out + x


if __name__ == "__main__":
    key = jax.random.PRNGKey(0)
    B, C, H, W = 2, 4, 16, 16

    k_x, k_w1, k_b1, k_w2, k_b2 = jax.random.split(key, 5)
    x = jax.random.normal(k_x, (B, C, H, W), dtype=jnp.float32)
    w1 = jax.random.normal(k_w1, (C, C, 3, 3), dtype=jnp.float32) * 0.1
    b1 = jax.random.normal(k_b1, (C,), dtype=jnp.float32) * 0.1
    w2 = jax.random.normal(k_w2, (C, C, 3, 3), dtype=jnp.float32) * 0.1
    b2 = jax.random.normal(k_b2, (C,), dtype=jnp.float32) * 0.1
    alpha = jnp.float32(0.25)  # nn.PReLU() default: single parameter, init 0.25

    out = jax.block_until_ready(residual_block(x, w1, b1, w2, b2, alpha))
    ref = jax.block_until_ready(_reference(x, w1, b1, w2, b2, alpha))
    np.testing.assert_allclose(np.asarray(out), np.asarray(ref), rtol=1e-5, atol=2e-5)

    print("KERNEL_OK")
</pallas_src>

<mosaic_0001>
module attributes {stable_mosaic.version = 11 : i64} {
  func.func @_residual_block_kernel(%arg0: i32, %arg1: memref<1xf32, #tpu.memory_space<smem>>, %arg2: memref<1x512xi32, #tpu.memory_space<vmem>>, %arg3: memref<1x512xi32, #tpu.memory_space<vmem>>, %arg4: memref<1x8x512xf32, #tpu.memory_space<vmem>>, %arg5: memref<9x8x8xf32, #tpu.memory_space<vmem>>, %arg6: memref<8x1xf32, #tpu.memory_space<vmem>>, %arg7: memref<9x8x8xf32, #tpu.memory_space<vmem>>, %arg8: memref<8x1xf32, #tpu.memory_space<vmem>>, %arg9: memref<1x8x512xf32, #tpu.memory_space<vmem>>) attributes {dimension_semantics = [#tpu.dimension_semantics<parallel>], iteration_bounds = array<i64: 1>, scalar_prefetch = 0 : i64, scratch_operands = 0 : i64, tpu.core_type = #tpu.core_type<tc>, window_params = [{transform_indices = @transform_0, window_bounds = array<i64: 1>}, {pipeline_mode = #tpu.pipeline_mode<synchronous>, transform_indices = @transform_1, window_bounds = array<i64: 1, 512>}, {pipeline_mode = #tpu.pipeline_mode<synchronous>, transform_indices = @transform_2, window_bounds = array<i64: 1, 512>}, {transform_indices = @transform_3, window_bounds = array<i64: 1, 8, 512>}, {pipeline_mode = #tpu.pipeline_mode<synchronous>, transform_indices = @transform_4, window_bounds = array<i64: 9, 8, 8>}, {pipeline_mode = #tpu.pipeline_mode<synchronous>, transform_indices = @transform_5, window_bounds = array<i64: 8, 1>}, {pipeline_mode = #tpu.pipeline_mode<synchronous>, transform_indices = @transform_6, window_bounds = array<i64: 9, 8, 8>}, {pipeline_mode = #tpu.pipeline_mode<synchronous>, transform_indices = @transform_7, window_bounds = array<i64: 8, 1>}, {transform_indices = @transform_8, window_bounds = array<i64: 1, 8, 512>}]} {
    %c0 = arith.constant 0 : index
    %c0_0 = arith.constant 0 : index
    %c0_1 = arith.constant 0 : index
    %0 = vector.load %arg4[%c0, %c0_0, %c0_1] : memref<1x8x512xf32, #tpu.memory_space<vmem>>, vector<1x8x512xf32>
    %1 = vector.shape_cast %0 : vector<1x8x512xf32> to vector<8x512xf32>
    %c0_2 = arith.constant 0 : index
    %c0_3 = arith.constant 0 : index
    %2 = vector.load %arg2[%c0_2, %c0_3] : memref<1x512xi32, #tpu.memory_space<vmem>>, vector<1x512xi32>
    %3 = vector.shape_cast %2 : vector<1x512xi32> to vector<1x512xi32>
    %4 = vector.broadcast %3 : vector<1x512xi32> to vector<8x512xi32>
    %c0_4 = arith.constant 0 : index
    %c0_5 = arith.constant 0 : index
    %5 = vector.load %arg3[%c0_4, %c0_5] : memref<1x512xi32, #tpu.memory_space<vmem>>, vector<1x512xi32>
    %6 = vector.shape_cast %5 : vector<1x512xi32> to vector<1x512xi32>
    %7 = vector.broadcast %6 : vector<1x512xi32> to vector<8x512xi32>
    %c1_i32 = arith.constant 1 : i32
    %8 = vector.broadcast %c1_i32 : i32 to vector<8x512xi32>
    %9 = arith.cmpi eq, %4, %8 : vector<8x512xi32>
    %c2_i32 = arith.constant 2 : i32
    %10 = vector.broadcast %c2_i32 : i32 to vector<8x512xi32>
    %11 = arith.cmpi eq, %4, %10 : vector<8x512xi32>
    %c1_i32_6 = arith.constant 1 : i32
    %12 = vector.broadcast %c1_i32_6 : i32 to vector<8x512xi32>
    %13 = arith.cmpi eq, %7, %12 : vector<8x512xi32>
    %c2_i32_7 = arith.constant 2 : i32
    %14 = vector.broadcast %c2_i32_7 : i32 to vector<8x512xi32>
    %15 = arith.cmpi eq, %7, %14 : vector<8x512xi32>
    %c1_i32_8 = arith.constant 1 : i32
    %16 = tpu.dynamic_rotate %1 by %c1_i32_8 dim 1 : vector<8x512xf32>, i32 -> vector<8x512xf32>
    %c511_i32 = arith.constant 511 : i32
    %17 = tpu.dynamic_rotate %1 by %c511_i32 dim 1 : vector<8x512xf32>, i32 -> vector<8x512xf32>
    %18 = arith.select %9, %17, %16 : vector<8x512xi1>, vector<8x512xf32>
    %19 = arith.select %11, %16, %17 : vector<8x512xi1>, vector<8x512xf32>
    %c0_9 = arith.constant 0 : index
    %c0_10 = arith.constant 0 : index
    %20 = vector.load %arg6[%c0_9, %c0_10] : memref<8x1xf32, #tpu.memory_space<vmem>>, vector<8x1xf32>
    %21 = vector.shape_cast %20 : vector<8x1xf32> to vector<8x1xf32>
    %22 = vector.broadcast %21 : vector<8x1xf32> to vector<8x512xf32>
    %c16_i32 = arith.constant 16 : i32
    %23 = tpu.dynamic_rotate %18 by %c16_i32 dim 1 : vector<8x512xf32>, i32 -> vector<8x512xf32>
    %c496_i32 = arith.constant 496 : i32
    %24 = tpu.dynamic_rotate %18 by %c496_i32 dim 1 : vector<8x512xf32>, i32 -> vector<8x512xf32>
    %25 = arith.select %13, %24, %23 : vector<8x512xi1>, vector<8x512xf32>
    %26 = arith.select %15, %23, %24 : vector<8x512xi1>, vector<8x512xf32>
    %c0_11 = arith.constant 0 : index
    %c0_12 = arith.constant 0 : index
    %c0_13 = arith.constant 0 : index
    %27 = vector.load %arg5[%c0_11, %c0_12, %c0_13] : memref<9x8x8xf32, #tpu.memory_space<vmem>>, vector<1x8x8xf32>
    %28 = vector.shape_cast %27 : vector<1x8x8xf32> to vector<8x8xf32>
    %cst = arith.constant dense<0.000000e+00> : vector<8x512xf32>
    %29 = tpu.matmul %28, %25, %cst {dimension_numbers = #tpu.dot_dimension_numbers<[1], [0], [0], [1], [0, 0, 1, 1], [], []>} : vector<8x8xf32>, vector<8x512xf32>, vector<8x512xf32> -> vector<8x512xf32>
    %30 = arith.addf %22, %29 : vector<8x512xf32>
    %c3 = arith.constant 3 : index
    %c0_14 = arith.constant 0 : index
    %c0_15 = arith.constant 0 : index
    %31 = vector.load %arg5[%c3, %c0_14, %c0_15] : memref<9x8x8xf32, #tpu.memory_space<vmem>>, vector<1x8x8xf32>
    %32 = vector.shape_cast %31 : vector<1x8x8xf32> to vector<8x8xf32>
    %cst_16 = arith.constant dense<0.000000e+00> : vector<8x512xf32>
    %33 = tpu.matmul %32, %18, %cst_16 {dimension_numbers = #tpu.dot_dimension_numbers<[1], [0], [0], [1], [0, 0, 1, 1], [], []>} : vector<8x8xf32>, vector<8x512xf32>, vector<8x512xf32> -> vector<8x512xf32>
    %34 = arith.addf %30, %33 : vector<8x512xf32>
    %c6 = arith.constant 6 : index
    %c0_17 = arith.constant 0 : index
    %c0_18 = arith.constant 0 : index
    %35 = vector.load %arg5[%c6, %c0_17, %c0_18] : memref<9x8x8xf32, #tpu.memory_space<vmem>>, vector<1x8x8xf32>
    %36 = vector.shape_cast %35 : vector<1x8x8xf32> to vector<8x8xf32>
    %cst_19 = arith.constant dense<0.000000e+00> : vector<8x512xf32>
    %37 = tpu.matmul %36, %26, %cst_19 {dimension_numbers = #tpu.dot_dimension_numbers<[1], [0], [0], [1], [0, 0, 1, 1], [], []>} : vector<8x8xf32>, vector<8x512xf32>, vector<8x512xf32> -> vector<8x512xf32>
    %38 = arith.addf %34, %37 : vector<8x512xf32>
    %c16_i32_20 = arith.constant 16 : i32
    %39 = tpu.dynamic_rotate %1 by %c16_i32_20 dim 1 : vector<8x512xf32>, i32 -> vector<8x512xf32>
    %c496_i32_21 = arith.constant 496 : i32
    %40 = tpu.dynamic_rotate %1 by %c496_i32_21 dim 1 : vector<8x512xf32>, i32 -> vector<8x512xf32>
    %41 = arith.select %13, %40, %39 : vector<8x512xi1>, vector<8x512xf32>
    %42 = arith.select %15, %39, %40 : vector<8x512xi1>, vector<8x512xf32>
    %c1 = arith.constant 1 : index
    %c0_22 = arith.constant 0 : index
    %c0_23 = arith.constant 0 : index
    %43 = vector.load %arg5[%c1, %c0_22, %c0_23] : memref<9x8x8xf32, #tpu.memory_space<vmem>>, vector<1x8x8xf32>
    %44 = vector.shape_cast %43 : vector<1x8x8xf32> to vector<8x8xf32>
    %cst_24 = arith.constant dense<0.000000e+00> : vector<8x512xf32>
    %45 = tpu.matmul %44, %41, %cst_24 {dimension_numbers = #tpu.dot_dimension_numbers<[1], [0], [0], [1], [0, 0, 1, 1], [], []>} : vector<8x8xf32>, vector<8x512xf32>, vector<8x512xf32> -> vector<8x512xf32>
    %46 = arith.addf %38, %45 : vector<8x512xf32>
    %c4 = arith.constant 4 : index
    %c0_25 = arith.constant 0 : index
    %c0_26 = arith.constant 0 : index
    %47 = vector.load %arg5[%c4, %c0_25, %c0_26] : memref<9x8x8xf32, #tpu.memory_space<vmem>>, vector<1x8x8xf32>
    %48 = vector.shape_cast %47 : vector<1x8x8xf32> to vector<8x8xf32>
    %cst_27 = arith.constant dense<0.000000e+00> : vector<8x512xf32>
    %49 = tpu.matmul %48, %1, %cst_27 {dimension_numbers = #tpu.dot_dimension_numbers<[1], [0], [0], [1], [0, 0, 1, 1], [], []>} : vector<8x8xf32>, vector<8x512xf32>, vector<8x512xf32> -> vector<8x512xf32>
    %50 = arith.addf %46, %49 : vector<8x512xf32>
    %c7 = arith.constant 7 : index
    %c0_28 = arith.constant 0 : index
    %c0_29 = arith.constant 0 : index
    %51 = vector.load %arg5[%c7, %c0_28, %c0_29] : memref<9x8x8xf32, #tpu.memory_space<vmem>>, vector<1x8x8xf32>
    %52 = vector.shape_cast %51 : vector<1x8x8xf32> to vector<8x8xf32>
    %cst_30 = arith.constant dense<0.000000e+00> : vector<8x512xf32>
    %53 = tpu.matmul %52, %42, %cst_30 {dimension_numbers = #tpu.dot_dimension_numbers<[1], [0], [0], [1], [0, 0, 1, 1], [], []>} : vector<8x8xf32>, vector<8x512xf32>, vector<8x512xf32> -> vector<8x512xf32>
    %54 = arith.addf %50, %53 : vector<8x512xf32>
    %c16_i32_31 = arith.constant 16 : i32
    %55 = tpu.dynamic_rotate %19 by %c16_i32_31 dim 1 : vector<8x512xf32>, i32 -> vector<8x512xf32>
    %c496_i32_32 = arith.constant 496 : i32
    %56 = tpu.dynamic_rotate %19 by %c496_i32_32 dim 1 : vector<8x512xf32>, i32 -> vector<8x512xf32>
    %57 = arith.select %13, %56, %55 : vector<8x512xi1>, vector<8x512xf32>
    %58 = arith.select %15, %55, %56 : vector<8x512xi1>, vector<8x512xf32>
    %c2 = arith.constant 2 : index
    %c0_33 = arith.constant 0 : index
    %c0_34 = arith.constant 0 : index
    %59 = vector.load %arg5[%c2, %c0_33, %c0_34] : memref<9x8x8xf32, #tpu.memory_space<vmem>>, vector<1x8x8xf32>
    %60 = vector.shape_cast %59 : vector<1x8x8xf32> to vector<8x8xf32>
    %cst_35 = arith.constant dense<0.000000e+00> : vector<8x512xf32>
    %61 = tpu.matmul %60, %57, %cst_35 {dimension_numbers = #tpu.dot_dimension_numbers<[1], [0], [0], [1], [0, 0, 1, 1], [], []>} : vector<8x8xf32>, vector<8x512xf32>, vector<8x512xf32> -> vector<8x512xf32>
    %62 = arith.addf %54, %61 : vector<8x512xf32>
    %c5 = arith.constant 5 : index
    %c0_36 = arith.constant 0 : index
    %c0_37 = arith.constant 0 : index
    %63 = vector.load %arg5[%c5, %c0_36, %c0_37] : memref<9x8x8xf32, #tpu.memory_space<vmem>>, vector<1x8x8xf32>
    %64 = vector.shape_cast %63 : vector<1x8x8xf32> to vector<8x8xf32>
    %cst_38 = arith.constant dense<0.000000e+00> : vector<8x512xf32>
    %65 = tpu.matmul %64, %19, %cst_38 {dimension_numbers = #tpu.dot_dimension_numbers<[1], [0], [0], [1], [0, 0, 1, 1], [], []>} : vector<8x8xf32>, vector<8x512xf32>, vector<8x512xf32> -> vector<8x512xf32>
    %66 = arith.addf %62, %65 : vector<8x512xf32>
    %c8 = arith.constant 8 : index
    %c0_39 = arith.constant 0 : index
    %c0_40 = arith.constant 0 : index
    %67 = vector.load %arg5[%c8, %c0_39, %c0_40] : memref<9x8x8xf32, #tpu.memory_space<vmem>>, vector<1x8x8xf32>
    %68 = vector.shape_cast %67 : vector<1x8x8xf32> to vector<8x8xf32>
    %cst_41 = arith.constant dense<0.000000e+00> : vector<8x512xf32>
    %69 = tpu.matmul %68, %58, %cst_41 {dimension_numbers = #tpu.dot_dimension_numbers<[1], [0], [0], [1], [0, 0, 1, 1], [], []>} : vector<8x8xf32>, vector<8x512xf32>, vector<8x512xf32> -> vector<8x512xf32>
    %70 = arith.addf %66, %69 : vector<8x512xf32>
    %c0_42 = arith.constant 0 : index
    %71 = memref.load %arg1[%c0_42] : memref<1xf32, #tpu.memory_space<smem>>
    %cst_43 = arith.constant 0.000000e+00 : f32
    %72 = vector.broadcast %cst_43 : f32 to vector<8x512xf32>
    %73 = arith.cmpf ogt, %70, %72 : vector<8x512xf32>
    %74 = vector.broadcast %71 : f32 to vector<8x512xf32>
    %75 = arith.mulf %74, %70 : vector<8x512xf32>
    %76 = arith.select %73, %70, %75 : vector<8x512xi1>, vector<8x512xf32>
    %c1_i32_44 = arith.constant 1 : i32
    %77 = tpu.dynamic_rotate %76 by %c1_i32_44 dim 1 : vector<8x512xf32>, i32 -> vector<8x512xf32>
    %c511_i32_45 = arith.constant 511 : i32
    %78 = tpu.dynamic_rotate %76 by %c511_i32_45 dim 1 : vector<8x512xf32>, i32 -> vector<8x512xf32>
    %79 = arith.select %9, %78, %77 : vector<8x512xi1>, vector<8x512xf32>
    %80 = arith.select %11, %77, %78 : vector<8x512xi1>, vector<8x512xf32>
    %c0_46 = arith.constant 0 : index
    %c0_47 = arith.constant 0 : index
    %81 = vector.load %arg8[%c0_46, %c0_47] : memref<8x1xf32, #tpu.memory_space<vmem>>, vector<8x1xf32>
    %82 = vector.shape_cast %81 : vector<8x1xf32> to vector<8x1xf32>
    %83 = vector.broadcast %82 : vector<8x1xf32> to vector<8x512xf32>
    %c16_i32_48 = arith.constant 16 : i32
    %84 = tpu.dynamic_rotate %79 by %c16_i32_48 dim 1 : vector<8x512xf32>, i32 -> vector<8x512xf32>
    %c496_i32_49 = arith.constant 496 : i32
    %85 = tpu.dynamic_rotate %79 by %c496_i32_49 dim 1 : vector<8x512xf32>, i32 -> vector<8x512xf32>
    %86 = arith.select %13, %85, %84 : vector<8x512xi1>, vector<8x512xf32>
    %87 = arith.select %15, %84, %85 : vector<8x512xi1>, vector<8x512xf32>
    %c0_50 = arith.constant 0 : index
    %c0_51 = arith.constant 0 : index
    %c0_52 = arith.constant 0 : index
    %88 = vector.load %arg7[%c0_50, %c0_51, %c0_52] : memref<9x8x8xf32, #tpu.memory_space<vmem>>, vector<1x8x8xf32>
    %89 = vector.shape_cast %88 : vector<1x8x8xf32> to vector<8x8xf32>
    %cst_53 = arith.constant dense<0.000000e+00> : vector<8x512xf32>
    %90 = tpu.matmul %89, %86, %cst_53 {dimension_numbers = #tpu.dot_dimension_numbers<[1], [0], [0], [1], [0, 0, 1, 1], [], []>} : vector<8x8xf32>, vector<8x512xf32>, vector<8x512xf32> -> vector<8x512xf32>
    %91 = arith.addf %83, %90 : vector<8x512xf32>
    %c3_54 = arith.constant 3 : index
    %c0_55 = arith.constant 0 : index
    %c0_56 = arith.constant 0 : index
    %92 = vector.load %arg7[%c3_54, %c0_55, %c0_56] : memref<9x8x8xf32, #tpu.memory_space<vmem>>, vector<1x8x8xf32>
    %93 = vector.shape_cast %92 : vector<1x8x8xf32> to vector<8x8xf32>
    %cst_57 = arith.constant dense<0.000000e+00> : vector<8x512xf32>
    %94 = tpu.matmul %93, %79, %cst_57 {dimension_numbers = #tpu.dot_dimension_numbers<[1], [0], [0], [1], [0, 0, 1, 1], [], []>} : vector<8x8xf32>, vector<8x512xf32>, vector<8x512xf32> -> vector<8x512xf32>
    %95 = arith.addf %91, %94 : vector<8x512xf32>
    %c6_58 = arith.constant 6 : index
    %c0_59 = arith.constant 0 : index
    %c0_60 = arith.constant 0 : index
    %96 = vector.load %arg7[%c6_58, %c0_59, %c0_60] : memref<9x8x8xf32, #tpu.memory_space<vmem>>, vector<1x8x8xf32>
    %97 = vector.shape_cast %96 : vector<1x8x8xf32> to vector<8x8xf32>
    %cst_61 = arith.constant dense<0.000000e+00> : vector<8x512xf32>
    %98 = tpu.matmul %97, %87, %cst_61 {dimension_numbers = #tpu.dot_dimension_numbers<[1], [0], [0], [1], [0, 0, 1, 1], [], []>} : vector<8x8xf32>, vector<8x512xf32>, vector<8x512xf32> -> vector<8x512xf32>
    %99 = arith.addf %95, %98 : vector<8x512xf32>
    %c16_i32_62 = arith.constant 16 : i32
    %100 = tpu.dynamic_rotate %76 by %c16_i32_62 dim 1 : vector<8x512xf32>, i32 -> vector<8x512xf32>
    %c496_i32_63 = arith.constant 496 : i32
    %101 = tpu.dynamic_rotate %76 by %c496_i32_63 dim 1 : vector<8x512xf32>, i32 -> vector<8x512xf32>
    %102 = arith.select %13, %101, %100 : vector<8x512xi1>, vector<8x512xf32>
    %103 = arith.select %15, %100, %101 : vector<8x512xi1>, vector<8x512xf32>
    %c1_64 = arith.constant 1 : index
    %c0_65 = arith.constant 0 : index
    %c0_66 = arith.constant 0 : index
    %104 = vector.load %arg7[%c1_64, %c0_65, %c0_66] : memref<9x8x8xf32, #tpu.memory_space<vmem>>, vector<1x8x8xf32>
    %105 = vector.shape_cast %104 : vector<1x8x8xf32> to vector<8x8xf32>
    %cst_67 = arith.constant dense<0.000000e+00> : vector<8x512xf32>
    %106 = tpu.matmul %105, %102, %cst_67 {dimension_numbers = #tpu.dot_dimension_numbers<[1], [0], [0], [1], [0, 0, 1, 1], [], []>} : vector<8x8xf32>, vector<8x512xf32>, vector<8x512xf32> -> vector<8x512xf32>
    %107 = arith.addf %99, %106 : vector<8x512xf32>
    %c4_68 = arith.constant 4 : index
    %c0_69 = arith.constant 0 : index
    %c0_70 = arith.constant 0 : index
    %108 = vector.load %arg7[%c4_68, %c0_69, %c0_70] : memref<9x8x8xf32, #tpu.memory_space<vmem>>, vector<1x8x8xf32>
    %109 = vector.shape_cast %108 : vector<1x8x8xf32> to vector<8x8xf32>
    %cst_71 = arith.constant dense<0.000000e+00> : vector<8x512xf32>
    %110 = tpu.matmul %109, %76, %cst_71 {dimension_numbers = #tpu.dot_dimension_numbers<[1], [0], [0], [1], [0, 0, 1, 1], [], []>} : vector<8x8xf32>, vector<8x512xf32>, vector<8x512xf32> -> vector<8x512xf32>
    %111 = arith.addf %107, %110 : vector<8x512xf32>
    %c7_72 = arith.constant 7 : index
    %c0_73 = arith.constant 0 : index
    %c0_74 = arith.constant 0 : index
    %112 = vector.load %arg7[%c7_72, %c0_73, %c0_74] : memref<9x8x8xf32, #tpu.memory_space<vmem>>, vector<1x8x8xf32>
    %113 = vector.shape_cast %112 : vector<1x8x8xf32> to vector<8x8xf32>
    %cst_75 = arith.constant dense<0.000000e+00> : vector<8x512xf32>
    %114 = tpu.matmul %113, %103, %cst_75 {dimension_numbers = #tpu.dot_dimension_numbers<[1], [0], [0], [1], [0, 0, 1, 1], [], []>} : vector<8x8xf32>, vector<8x512xf32>, vector<8x512xf32> -> vector<8x512xf32>
    %115 = arith.addf %111, %114 : vector<8x512xf32>
    %c16_i32_76 = arith.constant 16 : i32
    %116 = tpu.dynamic_rotate %80 by %c16_i32_76 dim 1 : vector<8x512xf32>, i32 -> vector<8x512xf32>
    %c496_i32_77 = arith.constant 496 : i32
    %117 = tpu.dynamic_rotate %80 by %c496_i32_77 dim 1 : vector<8x512xf32>, i32 -> vector<8x512xf32>
    %118 = arith.select %13, %117, %116 : vector<8x512xi1>, vector<8x512xf32>
    %119 = arith.select %15, %116, %117 : vector<8x512xi1>, vector<8x512xf32>
    %c2_78 = arith.constant 2 : index
    %c0_79 = arith.constant 0 : index
    %c0_80 = arith.constant 0 : index
    %120 = vector.load %arg7[%c2_78, %c0_79, %c0_80] : memref<9x8x8xf32, #tpu.memory_space<vmem>>, vector<1x8x8xf32>
    %121 = vector.shape_cast %120 : vector<1x8x8xf32> to vector<8x8xf32>
    %cst_81 = arith.constant dense<0.000000e+00> : vector<8x512xf32>
    %122 = tpu.matmul %121, %118, %cst_81 {dimension_numbers = #tpu.dot_dimension_numbers<[1], [0], [0], [1], [0, 0, 1, 1], [], []>} : vector<8x8xf32>, vector<8x512xf32>, vector<8x512xf32> -> vector<8x512xf32>
    %123 = arith.addf %115, %122 : vector<8x512xf32>
    %c5_82 = arith.constant 5 : index
    %c0_83 = arith.constant 0 : index
    %c0_84 = arith.constant 0 : index
    %124 = vector.load %arg7[%c5_82, %c0_83, %c0_84] : memref<9x8x8xf32, #tpu.memory_space<vmem>>, vector<1x8x8xf32>
    %125 = vector.shape_cast %124 : vector<1x8x8xf32> to vector<8x8xf32>
    %cst_85 = arith.constant dense<0.000000e+00> : vector<8x512xf32>
    %126 = tpu.matmul %125, %80, %cst_85 {dimension_numbers = #tpu.dot_dimension_numbers<[1], [0], [0], [1], [0, 0, 1, 1], [], []>} : vector<8x8xf32>, vector<8x512xf32>, vector<8x512xf32> -> vector<8x512xf32>
    %127 = arith.addf %123, %126 : vector<8x512xf32>
    %c8_86 = arith.constant 8 : index
    %c0_87 = arith.constant 0 : index
    %c0_88 = arith.constant 0 : index
    %128 = vector.load %arg7[%c8_86, %c0_87, %c0_88] : memref<9x8x8xf32, #tpu.memory_space<vmem>>, vector<1x8x8xf32>
    %129 = vector.shape_cast %128 : vector<1x8x8xf32> to vector<8x8xf32>
    %cst_89 = arith.constant dense<0.000000e+00> : vector<8x512xf32>
    %130 = tpu.matmul %129, %119, %cst_89 {dimension_numbers = #tpu.dot_dimension_numbers<[1], [0], [0], [1], [0, 0, 1, 1], [], []>} : vector<8x8xf32>, vector<8x512xf32>, vector<8x512xf32> -> vector<8x512xf32>
    %131 = arith.addf %127, %130 : vector<8x512xf32>
    %cst_90 = arith.constant 1.000000e-01 : f32
    %132 = vector.broadcast %cst_90 : f32 to vector<8x512xf32>
    %133 = arith.mulf %131, %132 : vector<8x512xf32>
    %134 = arith.addf %133, %1 : vector<8x512xf32>
    %c0_91 = arith.constant 0 : index
    %c0_92 = arith.constant 0 : index
    %c0_93 = arith.constant 0 : index
    %135 = vector.load %arg9[%c0_91, %c0_92, %c0_93] : memref<1x8x512xf32, #tpu.memory_space<vmem>>, vector<1x8x512xf32>
    %136 = vector.shape_cast %135 : vector<1x8x512xf32> to vector<8x512xf32>
    %137 = vector.shape_cast %134 : vector<8x512xf32> to vector<1x8x512xf32>
    tpu.vector_store %arg9[%c0_91, %c0_92, %c0_93], %137 {strides = array<i32>} : memref<1x8x512xf32, #tpu.memory_space<vmem>>, vector<1x8x512xf32>,
    return
  }
  func.func @transform_0(%arg0: i32) -> i32 {
    %c0_i32 = arith.constant 0 : i32
    %c0_i32_0 = arith.constant 0 : i32
    return %c0_i32 : i32
  }
  func.func @transform_1(%arg0: i32) -> (i32, i32) {
    %c0_i32 = arith.constant 0 : i32
    %c0_i32_0 = arith.constant 0 : i32
    %c0_i32_1 = arith.constant 0 : i32
    return %c0_i32, %c0_i32_0 : i32, i32
  }
  func.func @transform_2(%arg0: i32) -> (i32, i32) {
    %c0_i32 = arith.constant 0 : i32
    %c0_i32_0 = arith.constant 0 : i32
    %c0_i32_1 = arith.constant 0 : i32
    return %c0_i32, %c0_i32_0 : i32, i32
  }
  func.func @transform_3(%arg0: i32) -> (i32, i32, i32) {
    %c0_i32 = arith.constant 0 : i32
    %c0_i32_0 = arith.constant 0 : i32
    %c0_i32_1 = arith.constant 0 : i32
    return %arg0, %c0_i32, %c0_i32_0 : i32, i32, i32
  }
  func.func @transform_4(%arg0: i32) -> (i32, i32, i32) {
    %c0_i32 = arith.constant 0 : i32
    %c0_i32_0 = arith.constant 0 : i32
    %c0_i32_1 = arith.constant 0 : i32
    %c0_i32_2 = arith.constant 0 : i32
    return %c0_i32, %c0_i32_0, %c0_i32_1 : i32, i32, i32
  }
  func.func @transform_5(%arg0: i32) -> (i32, i32) {
    %c0_i32 = arith.constant 0 : i32
    %c0_i32_0 = arith.constant 0 : i32
    %c0_i32_1 = arith.constant 0 : i32
    return %c0_i32, %c0_i32_0 : i32, i32
  }
  func.func @transform_6(%arg0: i32) -> (i32, i32, i32) {
    %c0_i32 = arith.constant 0 : i32
    %c0_i32_0 = arith.constant 0 : i32
    %c0_i32_1 = arith.constant 0 : i32
    %c0_i32_2 = arith.constant 0 : i32
    return %c0_i32, %c0_i32_0, %c0_i32_1 : i32, i32, i32
  }
  func.func @transform_7(%arg0: i32) -> (i32, i32) {
    %c0_i32 = arith.constant 0 : i32
    %c0_i32_0 = arith.constant 0 : i32
    %c0_i32_1 = arith.constant 0 : i32
    return %c0_i32, %c0_i32_0 : i32, i32
  }
  func.func @transform_8(%arg0: i32) -> (i32, i32, i32) {
    %c0_i32 = arith.constant 0 : i32
    %c0_i32_0 = arith.constant 0 : i32
    %c0_i32_1 = arith.constant 0 : i32
    return %arg0, %c0_i32, %c0_i32_0 : i32, i32, i32
  }
}

</mosaic_0001>

<bundles_post_ra>
// kernel: residual_block.1
= control target key start
LH: loop header
LB: loop body
LE: loop exit
PB: predicated region body
PF: predicated region fallthrough
CT: control target
= control target key end

     0   :  { %s2164_s9 = smov 127   ;;  %s2165_s10 = smov 1   ;;  %v68_v6 = vlaneseq  ;;  %v2916_v21 = vmov 0  ;;  %v2918_v22 = vmov 0  ;;  %v2922_v29 = vmov 0  ;;  %s2889_s3 = inlined_call_operand.vmem [shape: f32[1,8,512], index: 3, kind: input, shape index: {}]   ;;  %s2890_s1 = inlined_call_operand.vmem [shape: s32[1,512], index: 1, kind: input, shape index: {}]   ;;  %s2891_s5 = inlined_call_operand.vmem [shape: f32[8,1], index: 5, kind: input, shape index: {}]   ;;  %s2892_s2 = inlined_call_operand.vmem [shape: s32[1,512], index: 2, kind: input, shape index: {}]   ;;  %s2893_s4 = inlined_call_operand.vmem [shape: f32[9,8,8], index: 4, kind: input, shape index: {}]   ;;  %s2894_s0 = inlined_call_operand.<no memory space> [shape: f32[1], index: 0, kind: input, shape index: {}]   ;;  %s2895_s7 = inlined_call_operand.vmem [shape: f32[8,1], index: 7, kind: input, shape index: {}]   ;;  %s2896_s6 = inlined_call_operand.vmem [shape: f32[9,8,8], index: 6, kind: input, shape index: {}]   ;;  %s2897_s8 = inlined_call_operand.vmem [shape: f32[1,8,512], index: 8, kind: output, shape index: {}]  }
   0x1   :  { %v2217_v0 = vld [vmem:[%s2889_s3] sm:$0xff]  ;;  %v2222_v1 = vld [vmem:[%s2889_s3 + $0x8] sm:$0xff]  ;;  %v2231_v3 = vld [vmem:[%s2889_s3 + $0x10] sm:$0xff]  ;;  %s2167_s17 = smov 16   ;;  %v2924_v45 = vmov 0  ;;  %v2926_v46 = vmov 0 }
   0x2   :  { %v2068_v2 = vpack.i.bf16 %v2222_v1, %v2217_v0  ;;  %v2236_v4 = vld [vmem:[%s2889_s3 + $0x18] sm:$0xff]  ;;  %v34_v9 = vld [vmem:[%s2890_s1] sm:$0xf]  ;;  %v2245_v10 = vand.u32 127, %v68_v6  ;;  %s2166_s1 = smov 112   ;;  %v2088_v43 = vpack.i.bf16 %v2231_v3, %v2222_v1  ;;  %v2093_v44 = vpack.i.bf16 %v2231_v3, %v2217_v0 }
   0x3   :  { %v2073_v5 = vpack.i.bf16 %v2236_v4, %v2231_v3  ;;  %v38_v11 = vperm.slane %v34_v9, 3  ;;  %v35_v12 = vperm.slane %v34_v9, 0  ;;  %v36_v13 = vperm.slane %v34_v9, 1  ;;  %v96_v58 = vld [vmem:[%s2891_s5] sm:$0xff] }
   0x4   :  { %2069 = vrot.lane.b32.xlu1 %v2068_v2, %s2164_s9  ;;  %2059 = vrot.lane.b32.xlu0 %v2068_v2, %s2165_s10  ;;  %v37_v14 = vperm.slane %v34_v9, 2  ;;  %vm2898_vm0 = vcmp.lt.s32.totalorder %v2245_v10, 127  ;;  %vm2899_vm1 = vcmp.lt.s32.totalorder %v2245_v10, 1  ;;  %v2928_v50 = vmov 0  ;;  %v39_v59 = vld [vmem:[%s2892_s2] sm:$0xf] }
   0x5   :  { %vm2249_vm2 = vcmp.eq.s32.totalorder %v38_v11, 1  ;;  %vm2253_vm3 = vcmp.eq.s32.totalorder %v35_v12, 1  ;;  %vm2259_vm4 = vcmp.eq.s32.totalorder %v36_v13, 1  ;;  %vm2316_vm6 = vcmp.eq.s32.totalorder %v36_v13, 2 }
   0x6   :  { %v2917_v21 = vsel %vm2249_vm2, 4294967295, %v2916_v21  ;;  %v2919_v22 = vsel %vm2253_vm3, 4294967295, %v2918_v22  ;;  %vm2263_vm5 = vcmp.eq.s32.totalorder %v37_v14, 1  ;;  %v2925_v45 = vsel %vm2316_vm6, 4294967295, %v2924_v45 }
   0x7   :  { %v2923_v29 = vsel %vm2263_vm5, 4294967295, %v2922_v29  ;;  %vm2320_vm7 = vcmp.eq.s32.totalorder %v37_v14, 2  ;;  %vm2342_vm8 = vcmp.eq.s32.totalorder %v35_v12, 2  ;;  %vm2346_vm9 = vcmp.eq.s32.totalorder %v38_v11, 2 }
   0x8   :  { %v2927_v46 = vsel %vm2320_vm7, 4294967295, %v2926_v46  ;;  %v2929_v50 = vsel %vm2342_vm8, 4294967295, %v2928_v50  ;;  %v2930_v51 = vmov 0  ;;  %v2168_v57 = vmov 0  }
   0x9   :  { %v2931_v51 = vsel %vm2346_vm9, 4294967295, %v2930_v51  ;;  %2108 = vset.pattern.permute.xlu1 %v2168_v57  ;;  %2159 = vset.pattern.permute.xlu0 %v2168_v57  ;;  %v42_v61 = vperm.slane %v39_v59, 2  ;;  %v43_v62 = vperm.slane %v39_v59, 3  ;;  %vm2905_vm10 = vcmp.lt.s32.totalorder %v2245_v10, 16 }
   0xa   :  { %vm2900_vm11 = vcmp.lt.s32.totalorder %v2245_v10, 112  ;;  %vm2901_vm14 = vcmask 64512   ;;  %v40_v12 = vperm.slane %v39_v59, 0  ;;  %v41_v13 = vperm.slane %v39_v59, 1 }
   0xb   :  { %vm2379_vm12 = vcmp.eq.s32.totalorder %v42_v61, 1  ;;  %vm2383_vm13 = vcmp.eq.s32.totalorder %v43_v62, 1  ;;  %vm2402_vm15 = vcmp.eq.s32.totalorder %v42_v61, 2 }
   0xc   :  { %2074 = vrot.lane.b32.xlu1 %v2073_v5, %s2164_s9  ;;  %2064 = vrot.lane.b32.xlu0 %v2073_v5, %s2165_s10 }
  0x76   :  { %v2070_v7 = vpop.permute.xlu1 %2069  ;;  %v2060_v8 = vpop.permute.xlu0 %2059 }
  0x77   :  { %v2072_v15 = vunpack.i.h.bf16 %v2070_v7  ;;  %v2071_v16 = vunpack.i.l.bf16 %v2070_v7  ;;  %v2062_v17 = vunpack.i.h.bf16 %v2060_v8  ;;  %v2061_v18 = vunpack.i.l.bf16 %v2060_v8 }
  0x79   :  { %v86_v27 = vsel %vm2898_vm0, %v2071_v16, %v2072_v15  ;;  %v73_v30 = vsel %vm2899_vm1, %v2061_v18, %v2062_v17 }
  0x7e   :  { %v2075_v19 = vpop.permute.xlu1 %2074  ;;  %v2065_v20 = vpop.permute.xlu0 %2064 }
  0x7f   :  { %v2077_v23 = vunpack.i.h.bf16 %v2075_v19  ;;  %v2076_v24 = vunpack.i.l.bf16 %v2075_v19  ;;  %v2067_v25 = vunpack.i.h.bf16 %v2065_v20  ;;  %v2066_v26 = vunpack.i.l.bf16 %v2065_v20 }
  0x81   :  { %v74_v31 = vsel %vm2899_vm1, %v2067_v25, %v2061_v18  ;;  %v71_v32 = vsel %vm2899_vm1, %v2066_v26, %v2067_v25  ;;  %v87_v33 = vsel %vm2898_vm0, %v2077_v23, %v2071_v16  ;;  %v72_v34 = vsel %vm2899_vm1, %v2062_v17, %v2066_v26  ;;  %v136_v18 = vld [vmem:[%s2893_s4] sm:$0xff] }
  0x82   :  { %v2279_v35 = vsel %vm2249_vm2, %v87_v33, %v71_v32  ;;  %v84_v36 = vsel %vm2898_vm0, %v2076_v24, %v2077_v23  ;;  %v85_v37 = vsel %vm2898_vm0, %v2072_v15, %v2076_v24  ;;  %v2287_v38 = vsel %vm2253_vm3, %v86_v27, %v74_v31 }
  0x83   :  { %121 = vrot.lane.b32.xlu1 %v2279_v35, %s2166_s1  ;;  %v2293_v39 = vsel %vm2259_vm4, %v85_v37, %v73_v30  ;;  %v2297_v40 = vsel %vm2263_vm5, %v84_v36, %v72_v34  ;;  %v2329_v47 = vsel %vm2316_vm6, %v73_v30, %v85_v37  ;;  %v2333_v48 = vsel %vm2320_vm7, %v72_v34, %v84_v36 }
  0x84   :  { %v2078_v41 = vpack.i.bf16 %v2297_v40, %v2293_v39  ;;  %v2083_v42 = vpack.i.bf16 %v2297_v40, %v2287_v38  ;;  %v2098_v49 = vpack.i.bf16 %v2333_v48, %v2329_v47  ;;  %v2352_v52 = vsel %vm2342_vm8, %v74_v31, %v86_v27 }
  0x85   :  { %v2356_v53 = vsel %vm2346_vm9, %v71_v32, %v87_v33  ;;  %v2103_v54 = vpack.i.bf16 %v2333_v48, %v2352_v52  ;;  %v2936_v23 = vmov 0  ;;  %vm2406_vm0 = vcmp.eq.s32.totalorder %v43_v62, 2 }
  0x86   :  { %2079 = vrot.lane.b32.xlu2 %v2078_v41, %s2167_s17  ;;  %2084 = vrot.lane.b32.xlu0 %v2083_v42, %s2166_s1  ;;  %v2937_v23 = vsel %vm2402_vm15, 4294967295, %v2936_v23  ;;  %v2939_v24 = vmov 0  ;;  %vm2418_vm1 = vcmp.eq.s32.totalorder %v40_v12, 1  ;;  %vm2438_vm6 = vcmp.eq.s32.totalorder %v40_v12, 2  ;;  %v2043_v42 = vld [vmem:[%s2896_s6 + $0x28] sm:$0xff] }
  0x87   :  { %2938 = vst [vmem:[#allocation3_spill] sm:$0xff] %v2937_v23  ;;  %v2940_v24 = vsel %vm2406_vm0, 4294967295, %v2939_v24  ;;  %vm2442_vm7 = vcmp.eq.s32.totalorder %v41_v13, 2  ;;  %vm2958_vm5 = vcmp.lt.s32.totalorder %v2245_v10, 112 }
  0x88   :  { %2941 = vst [vmem:[#allocation4_spill] sm:$0xff] %v2940_v24  ;;  %vm2959_vm3 = vmmov %vm2958_vm5 }
  0x8b   :  { %2089 = vrot.lane.b32.xlu1 %v2088_v43, %s2167_s17  ;;  %v2048_v43 = vld [vmem:[%s2896_s6 + $0x40] sm:$0xff] }
  0x8e   :  { %108 = vrot.lane.b32.xlu2 %v2279_v35, %s2167_s17  ;;  %117 = vrot.lane.b32.xlu0 %v2293_v39, %s2166_s1 }
  0x93   :  { %421 = vrot.lane.b32.xlu1 %v2236_v4, %s2166_s1 }
  0x96   :  { %102 = vrot.lane.b32.xlu2 %v2287_v38, %s2167_s17  ;;  %2094 = vrot.lane.b32.xlu0 %v2093_v44, %s2166_s1  ;;  %v1969_v44 = vld [vmem:[%s2893_s4 + $0x18] sm:$0xff] }
  0x9b   :  { %2099 = vrot.lane.b32.xlu1 %v2098_v49, %s2167_s17 }
  0x9e   :  { %409 = vrot.lane.b32.xlu2 %v2236_v4, %s2167_s17  ;;  %417 = vrot.lane.b32.xlu0 %v2222_v1, %s2166_s1 }
  0xa3   :  { %720 = vrot.lane.b32.xlu1 %v2356_v53, %s2166_s1 }
  0xa6   :  { %403 = vrot.lane.b32.xlu2 %v2217_v0, %s2167_s17  ;;  %2104 = vrot.lane.b32.xlu0 %v2103_v54, %s2166_s1 }
  0xab   :  { %99 = vperm.xlu1 %2108, %v96_v58  }
  0xae   :  { %708 = vrot.lane.b32.xlu2 %v2356_v53, %s2167_s17  ;;  %716 = vrot.lane.b32.xlu0 %v2329_v47, %s2166_s1 }
  0xb6   :  { %702 = vrot.lane.b32.xlu2 %v2352_v52, %s2167_s17 }
  0xe0   :  { %v2080_v55 = vpop.permute.xlu2 %2079 }
  0xe1   :  { %v2082_v2 = vunpack.i.h.bf16 %v2080_v55  ;;  %v2081_v5 = vunpack.i.l.bf16 %v2080_v55 }
  0xe3   :  { %v112_v15 = vsel %vm2905_vm10, %v2081_v5, %v2082_v2 }
  0xe8   :  { %v109_v56 = vpop.permute.xlu2 %108 }
  0xe9   :  { %v111_v14 = vsel %vm2905_vm10, %v2082_v2, %v109_v56  ;;  %v1974_v2 = vld [vmem:[%s2893_s4 + $0x30] sm:$0xff] }
  0xf0   :  { %v103_v63 = vpop.permute.xlu2 %102 }
  0xf1   :  { %v113_v34 = vsel %vm2905_vm10, %v103_v63, %v2081_v5 }
  0xf5   :  { %v122_v60 = vpop.permute.xlu1 %121 }
  0xf8   :  { %v2085_v6 = vpop.permute.xlu0 %2084  ;;  %v410_v32 = vpop.permute.xlu2 %409 }
  0xf9   :  { %v2087_v7 = vunpack.i.h.bf16 %v2085_v6  ;;  %v2086_v8 = vunpack.i.l.bf16 %v2085_v6 }
  0xfb   :  { %v124_v16 = vsel %vm2900_vm11, %v2087_v7, %v122_v60  ;;  %v127_v17 = vsel %vm2900_vm11, %v122_v60, %v2086_v8  ;;  %vm2422_vm11 = vcmp.eq.s32.totalorder %v41_v13, 1 }
  0xfc   :  { %v130_v19 = vsel %vm2379_vm12, %v124_v16, %v112_v15  ;;  %v131_v20 = vsel %vm2383_vm13, %v127_v17, %v111_v14  ;;  %v134_v26 = vsel %vm2402_vm15, %v112_v15, %v124_v16  ;;  %v135_v27 = vsel %vm2406_vm0, %v111_v14, %v127_v17 }
  0xfd   :  { %196 = vmatpush.msra.mxu2 %v130_v19  ;;  %216 = vmatpush.msra.mxu3 %v131_v20  ;;  %v2090_v25 = vpop.permute.xlu1 %2089 }
  0xfe   :  { %1967 = vmatmul.msk.f32.vlgmr.msra.gmra.mxu2 %vm2901_vm14, %v136_v18  ;;  %1968 = vmatmul.msk.f32.vlgmr.msra.gmra.mxu3 %vm2901_vm14, %v136_v18  ;;  %vm2946_vm14 = vcmp.lt.s32.totalorder %v2245_v10, 112  ;;  %v2092_v49 = vunpack.i.h.bf16 %v2090_v25  ;;  %v2091_v54 = vunpack.i.l.bf16 %v2090_v25 }
  0xff   :  { %285 = vmatpush.msrb.mxu2 %v2297_v40  ;;  %305 = vmatpush.msrb.mxu3 %v2279_v35  ;;  %v114_v35 = vsel %vm2905_vm10, %v109_v56, %v103_v63  ;;  %vm2947_vm9 = vmmov %vm2946_vm14 }
 0x100   :  { %v118_v33 = vpop.permute.xlu0 %117  ;;  %v404_v61 = vpop.permute.xlu2 %403 }
 0x101   :  { %374 = vmatpush.msra.mxu2 %v134_v26  ;;  %394 = vmatpush.msra.mxu3 %v135_v27  ;;  %v125_v36 = vsel %vm2946_vm14, %v118_v33, %v2087_v7  ;;  %v126_v37 = vsel %vm2947_vm9, %v2086_v8, %v118_v33  ;;  %vm2952_vm14 = vcmask 64512  }
 0x102   :  { %v128_v40 = vsel %vm2418_vm1, %v126_v37, %v114_v35  ;;  %v129_v41 = vsel %vm2422_vm11, %v125_v36, %v113_v34  ;;  %vm2953_vm10 = vmmov %vm2952_vm14  ;;  %v132_v55 = vsel %vm2438_vm6, %v114_v35, %v126_v37  ;;  %v133_v56 = vsel %vm2442_vm7, %v113_v34, %v125_v36  ;;  %v1984_v37 = vld [vmem:[%s2893_s4 + $0x20] sm:$0xff] }
 0x103   :  { %156 = vmatpush.msra.mxu0 %v128_v40  ;;  %176 = vmatpush.msra.mxu1 %v129_v41  ;;  %vm2954_vm9 = vmmov %vm2953_vm10 }
 0x104   :  { %1965 = vmatmul.msk.f32.vlgmr.msra.gmra.mxu0 %vm2952_vm14, %v136_v18  ;;  %1966 = vmatmul.msk.f32.vlgmr.msra.gmra.mxu1 %vm2953_vm10, %v136_v18  ;;  %vm2955_vm10 = vmmov %vm2954_vm9  ;;  %vm2956_vm14 = vcmp.lt.s32.totalorder %v2245_v10, 16 }
 0x105   :  { %245 = vmatpush.msrb.mxu0 %v2287_v38  ;;  %265 = vmatpush.msrb.mxu1 %v2293_v39  ;;  %v422_v57 = vpop.permute.xlu1 %421  ;;  %v412_v38 = vsel %vm2956_vm14, %v2091_v54, %v2092_v49  ;;  %vm2957_vm8 = vmmov %vm2956_vm14 }
 0x106   :  { %1972 = vmatmul.msk.f32.vlgmr.msrb.gmra.mxu2 %vm2954_vm9, %v1969_v44  ;;  %1973 = vmatmul.msk.f32.vlgmr.msrb.gmra.mxu3 %vm2955_vm10, %v1969_v44  ;;  %v411_v39 = vsel %vm2957_vm8, %v2092_v49, %v410_v32  ;;  %vm2960_vm2 = vmmov %vm2954_vm9  ;;  %vm2965_vm10 = vcmp.lt.s32.totalorder %v2245_v10, 112 }
 0x107   :  { %334 = vmatpush.msra.mxu0 %v132_v55  ;;  %354 = vmatpush.msra.mxu1 %v133_v56  ;;  %vm2961_vm9 = vmmov %vm2960_vm2 }
 0x108   :  { %v2095_v58 = vpop.permute.xlu0 %2094  ;;  %vm2966_vm14 = vmmov %vm2965_vm10 }
 0x109   :  { %v2097_v59 = vunpack.i.h.bf16 %v2095_v58  ;;  %v2096_v60 = vunpack.i.l.bf16 %v2095_v58 }
 0x10b   :  { %v423_v62 = vsel %vm2958_vm5, %v2097_v59, %v422_v57  ;;  %v426_v63 = vsel %vm2959_vm3, %v422_v57, %v2096_v60  ;;  %vm2962_vm5 = vmmov %vm2957_vm8 }
 0x10c   :  { %1970 = vmatmul.msk.f32.vlgmr.msrb.gmra.mxu0 %vm2960_vm2, %v1969_v44  ;;  %1971 = vmatmul.msk.f32.vlgmr.msrb.gmra.mxu1 %vm2961_vm9, %v1969_v44  ;;  %v429_v5 = vsel %vm2379_vm12, %v423_v62, %v412_v38  ;;  %v430_v6 = vsel %vm2383_vm13, %v426_v63, %v411_v39  ;;  %v414_v7 = vsel %vm2962_vm5, %v410_v32, %v404_v61  ;;  %vm2963_vm3 = vmmov %vm2960_vm2 }
 0x10d   :  { %495 = vmatpush.msrb.mxu2 %v429_v5  ;;  %515 = vmatpush.msrb.mxu3 %v430_v6  ;;  %v2100_v8 = vpop.permute.xlu1 %2099  ;;  %vm2964_vm8 = vmmov %vm2962_vm5  ;;  %v433_v20 = vsel %vm2402_vm15, %v412_v38, %v423_v62  ;;  %v434_v25 = vsel %vm2406_vm0, %v411_v39, %v426_v63  ;;  %v1989_v38 = vld [vmem:[%s2893_s4 + $0x38] sm:$0xff]  ;;  %v1994_v39 = vld [vmem:[%s2893_s4 + $0x10] sm:$0xff] }
 0x10e   :  { %1977 = vmatmul.msk.f32.vlgmr.msra.gmra.mxu2 %vm2963_vm3, %v1974_v2  ;;  %1978 = vmatmul.msk.f32.vlgmr.msra.gmra.mxu3 %vm2960_vm2, %v1974_v2  ;;  %v413_v13 = vsel %vm2964_vm8, %v404_v61, %v2091_v54  ;;  %vm2967_vm9 = vmmov %vm2960_vm2  ;;  %v2102_v18 = vunpack.i.h.bf16 %v2100_v8  ;;  %v2101_v19 = vunpack.i.l.bf16 %v2100_v8  ;;  %v1999_v61 = vld [vmem:[%s2893_s4 + $0x28] sm:$0xff]  ;;  %v2004_v62 = vld [vmem:[%s2893_s4 + $0x40] sm:$0xff] }
 0x10f   :  { %584 = vmatpush.msra.mxu2 %v2231_v3  ;;  %604 = vmatpush.msra.mxu3 %v2236_v4  ;;  %v709_v3 = vpop.permute.xlu2 %708  ;;  %vm2968_vm5 = vmmov %vm2960_vm2  ;;  %v1979_v4 = vld [vmem:[%s2893_s4 + $0x8] sm:$0xff] }
 0x110   :  { %v418_v12 = vpop.permute.xlu0 %417  ;;  %vm2969_vm3 = vmmov %vm2960_vm2 }
 0x111   :  { %v424_v14 = vsel %vm2965_vm10, %v418_v12, %v2097_v59  ;;  %v425_v15 = vsel %vm2966_vm14, %v2096_v60, %v418_v12  ;;  %vm2970_vm14 = vmmov %vm2965_vm10 }
 0x112   :  { %v427_v16 = vsel %vm2418_vm1, %v425_v15, %v414_v7  ;;  %v428_v17 = vsel %vm2422_vm11, %v424_v14, %v413_v13  ;;  %v431_v35 = vsel %vm2438_vm6, %v414_v7, %v425_v15  ;;  %v432_v36 = vsel %vm2442_vm7, %v413_v13, %v424_v14 }
 0x113   :  { %455 = vmatpush.msrb.mxu0 %v427_v16  ;;  %475 = vmatpush.msrb.mxu1 %v428_v17 }
 0x114   :  { %1975 = vmatmul.msk.f32.vlgmr.msra.gmra.mxu0 %vm2967_vm9, %v1974_v2  ;;  %1976 = vmatmul.msk.f32.vlgmr.msra.gmra.mxu1 %vm2968_vm5, %v1974_v2  ;;  %vm2971_vm9 = vmmov %vm2960_vm2 }
 0x115   :  { %544 = vmatpush.msra.mxu0 %v2217_v0  ;;  %564 = vmatpush.msra.mxu1 %v2222_v1  ;;  %v721_v0 = vpop.permute.xlu1 %720  ;;  %v711_v1 = vsel %vm2964_vm8, %v2101_v19, %v2102_v18  ;;  %vm2972_vm5 = vmmov %vm2960_vm2 }
 0x116   :  { %1982 = vmatmul.msk.f32.vlgmr.msrb.gmra.mxu2 %vm2969_vm3, %v1979_v4  ;;  %1983 = vmatmul.msk.f32.vlgmr.msrb.gmra.mxu3 %vm2960_vm2, %v1979_v4  ;;  %vm2973_vm3 = vmmov %vm2964_vm8 }
 0x117   :  { %673 = vmatpush.msrb.mxu2 %v433_v20  ;;  %693 = vmatpush.msrb.mxu3 %v434_v25  ;;  %v710_v40 = vsel %vm2973_vm3, %v2102_v18, %v709_v3  ;;  %v703_v49 = vpop.permute.xlu2 %702  ;;  %vm2974_vm8 = vmmov %vm2960_vm2 }
 0x118   :  { %v2105_v26 = vpop.permute.xlu0 %2104 }
 0x119   :  { %v2107_v27 = vunpack.i.h.bf16 %v2105_v26  ;;  %v2106_v32 = vunpack.i.l.bf16 %v2105_v26 }
 0x11b   :  { %v722_v33 = vsel %vm2965_vm10, %v2107_v27, %v721_v0  ;;  %v725_v34 = vsel %vm2970_vm14, %v721_v0, %v2106_v32  ;;  %vm2975_vm10 = vmmov %vm2973_vm3 }
 0x11c   :  { %1980 = vmatmul.msk.f32.vlgmr.msrb.gmra.mxu0 %vm2971_vm9, %v1979_v4  ;;  %1981 = vmatmul.msk.f32.vlgmr.msrb.gmra.mxu1 %vm2972_vm5, %v1979_v4  ;;  %v728_v41 = vsel %vm2379_vm12, %v722_v33, %v711_v1  ;;  %v729_v44 = vsel %vm2383_vm13, %v725_v34, %v710_v40  ;;  %v712_v55 = vsel %vm2975_vm10, %v703_v49, %v2101_v19  ;;  %vm2976_vm14 = vmmov %vm2973_vm3  ;;  %vm2977_vm9 = vcmp.lt.s32.totalorder %v2245_v10, 112 }
 0x11d   :  { %633 = vmatpush.msrb.mxu0 %v431_v35  ;;  %653 = vmatpush.msrb.mxu1 %v432_v36  ;;  %v713_v56 = vsel %vm2976_vm14, %v709_v3, %v703_v49  ;;  %vm2978_vm5 = vmmov %vm2977_vm9 }
 0x11e   :  { %1987 = vmatmul.msk.f32.vlgmr.msra.gmra.mxu2 %vm2960_vm2, %v1984_v37  ;;  %1988 = vmatmul.msk.f32.vlgmr.msra.gmra.mxu3 %vm2974_vm8, %v1984_v37  ;;  %vm2979_vm3 = vmmov %vm2960_vm2 }
 0x11f   :  { %794 = vmatpush.msra.mxu2 %v728_v41  ;;  %814 = vmatpush.msra.mxu3 %v729_v44  ;;  %vm2980_vm8 = vmmov %vm2960_vm2 }
 0x120   :  { %v717_v54 = vpop.permute.xlu0 %716  ;;  %vm2981_vm10 = vmmov %vm2960_vm2 }
 0x121   :  { %v723_v57 = vsel %vm2977_vm9, %v717_v54, %v2107_v27  ;;  %v724_v58 = vsel %vm2978_vm5, %v2106_v32, %v717_v54  ;;  %vm2982_vm14 = vmmov %vm2960_vm2 }
 0x122   :  { %v726_v59 = vsel %vm2418_vm1, %v724_v58, %v713_v56  ;;  %v727_v60 = vsel %vm2422_vm11, %v723_v57, %v712_v55  ;;  %vm2983_vm9 = vmmov %vm2960_vm2 }
 0x123   :  { %vm2984_vm5 = vmmov %vm2960_vm2 }
 0x124   :  { %1985 = vmatmul.msk.f32.vlgmr.msra.gmra.mxu0 %vm2979_vm3, %v1984_v37  ;;  %1986 = vmatmul.msk.f32.vlgmr.msra.gmra.mxu1 %vm2960_vm2, %v1984_v37  ;;  %vm2985_vm3 = vmmov %vm2960_vm2 }
 0x125   :  { %754 = vmatpush.msra.mxu0 %v726_v59  ;;  %774 = vmatpush.msra.mxu1 %v727_v60 }
 0x126   :  { %1992 = vmatmul.msk.f32.vlgmr.msrb.gmra.mxu2 %vm2980_vm8, %v1989_v38  ;;  %1993 = vmatmul.msk.f32.vlgmr.msrb.gmra.mxu3 %vm2981_vm10, %v1989_v38  ;;  %vm2986_vm8 = vmmov %vm2960_vm2 }
 0x127   :  { %883 = vmatpush.msrb.mxu2 %v2333_v48  ;;  %903 = vmatpush.msrb.mxu3 %v2356_v53  ;;  %v732_v48 = vsel %vm2402_vm15, %v711_v1, %v722_v33  ;;  %v733_v53 = vsel %vm2406_vm0, %v710_v40, %v725_v34  ;;  %vm2987_vm10 = vmmov %vm2960_vm2  ;;  %v100_v34 = vpop.permute.xlu1 %99 }
 0x128   :  { %vm2993_vm0 = vmmov %vm2960_vm2 }
 0x12c   :  { %1990 = vmatmul.msk.f32.vlgmr.msrb.gmra.mxu0 %vm2982_vm14, %v1989_v38  ;;  %1991 = vmatmul.msk.f32.vlgmr.msrb.gmra.mxu1 %vm2983_vm9, %v1989_v38  ;;  %vm2988_vm14 = vmmov %vm2960_vm2 }
 0x12d   :  { %843 = vmatpush.msrb.mxu0 %v2352_v52  ;;  %863 = vmatpush.msrb.mxu1 %v2329_v47  ;;  %v730_v52 = vsel %vm2438_vm6, %v713_v56, %v724_v58  ;;  %v731_v47 = vsel %vm2442_vm7, %v712_v55, %v723_v57  ;;  %vm2989_vm9 = vmmov %vm2960_vm2 }
 0x12e   :  { %1997 = vmatmul.msk.f32.vlgmr.msra.gmra.mxu2 %vm2984_vm5, %v1994_v39  ;;  %1998 = vmatmul.msk.f32.vlgmr.msra.gmra.mxu3 %vm2985_vm3, %v1994_v39  ;;  %vm2990_vm5 = vmmov %vm2960_vm2 }
 0x12f   :  { %972 = vmatpush.msra.mxu2 %v732_v48  ;;  %992 = vmatpush.msra.mxu3 %v733_v53  ;;  %vm2991_vm3 = vmmov %vm2960_vm2 }
 0x134   :  { %1995 = vmatmul.msk.f32.vlgmr.msra.gmra.mxu0 %vm2960_vm2, %v1994_v39  ;;  %1996 = vmatmul.msk.f32.vlgmr.msra.gmra.mxu1 %vm2986_vm8, %v1994_v39  ;;  %vm2992_vm8 = vmmov %vm2960_vm2 }
 0x135   :  { %932 = vmatpush.msra.mxu0 %v730_v52  ;;  %952 = vmatpush.msra.mxu1 %v731_v47 }
 0x136   :  { %2002 = vmatmul.msk.f32.vlgmr.msrb.gmra.mxu2 %vm2987_vm10, %v1999_v61  ;;  %2003 = vmatmul.msk.f32.vlgmr.msrb.gmra.mxu3 %vm2988_vm14, %v1999_v61 }
 0x13c   :  { %2000 = vmatmul.msk.f32.vlgmr.msrb.gmra.mxu0 %vm2989_vm9, %v1999_v61  ;;  %2001 = vmatmul.msk.f32.vlgmr.msrb.gmra.mxu1 %vm2990_vm5, %v1999_v61  ;;  %vm2994_vm5 = vcmp.lt.s32.totalorder %v2245_v10, 1 }
 0x13e   :  { %2007 = vmatmul.msk.f32.vlgmr.msra.gmra.mxu2 %vm2991_vm3, %v2004_v62  ;;  %2008 = vmatmul.msk.f32.vlgmr.msra.gmra.mxu3 %vm2960_vm2, %v2004_v62  ;;  %vm2995_vm3 = vcmp.lt.s32.totalorder %v2245_v10, 127 }
 0x13f   :  { %vm2996_vm2 = vmmov %vm2995_vm3 }
 0x144   :  { %2005 = vmatmul.msk.f32.vlgmr.msra.gmra.mxu0 %vm2992_vm8, %v2004_v62  ;;  %2006 = vmatmul.msk.f32.vlgmr.msra.gmra.mxu1 %vm2993_vm0, %v2004_v62  ;;  %vm2997_vm8 = vmmov %vm2996_vm2 }
 0x181   :  { %v158_v63 = vpop.f32.mrf.mxu0  ;;  %v178_v2 = vpop.f32.mrf.mxu1 }
 0x182   :  { %v198_v5 = vpop.f32.mrf.mxu2  ;;  %v218_v6 = vpop.f32.mrf.mxu3  ;;  %v221_v37 = vadd.f32 %v158_v63, %v100_v34  ;;  %v222_v40 = vadd.f32 %v178_v2, %v100_v34 }
 0x183   :  { %v223_v49 = vadd.f32 %v198_v5, %v100_v34  ;;  %v224_v54 = vadd.f32 %v218_v6, %v100_v34 }
 0x189   :  { %v247_v7 = vpop.f32.mrf.mxu0  ;;  %v267_v8 = vpop.f32.mrf.mxu1 }
 0x18a   :  { %v287_v12 = vpop.f32.mrf.mxu2  ;;  %v307_v13 = vpop.f32.mrf.mxu3  ;;  %v310_v55 = vadd.f32 %v247_v7, %v221_v37  ;;  %v311_v56 = vadd.f32 %v267_v8, %v222_v40 }
 0x18b   :  { %v312_v57 = vadd.f32 %v287_v12, %v223_v49  ;;  %v313_v58 = vadd.f32 %v307_v13, %v224_v54 }
 0x191   :  { %v336_v14 = vpop.f32.mrf.mxu0  ;;  %v356_v15 = vpop.f32.mrf.mxu1 }
 0x192   :  { %v376_v16 = vpop.f32.mrf.mxu2  ;;  %v396_v17 = vpop.f32.mrf.mxu3  ;;  %v399_v59 = vadd.f32 %v336_v14, %v310_v55  ;;  %v400_v60 = vadd.f32 %v356_v15, %v311_v56 }
 0x193   :  { %v401_v38 = vadd.f32 %v376_v16, %v312_v57  ;;  %v402_v39 = vadd.f32 %v396_v17, %v313_v58 }
 0x199   :  { %v457_v3 = vpop.f32.mrf.mxu0  ;;  %v477_v4 = vpop.f32.mrf.mxu1 }
 0x19a   :  { %v497_v18 = vpop.f32.mrf.mxu2  ;;  %v517_v19 = vpop.f32.mrf.mxu3  ;;  %v520_v48 = vadd.f32 %v457_v3, %v399_v59  ;;  %v521_v53 = vadd.f32 %v477_v4, %v400_v60 }
 0x19b   :  { %v522_v52 = vadd.f32 %v497_v18, %v401_v38  ;;  %v523_v47 = vadd.f32 %v517_v19, %v402_v39 }
 0x1a1   :  { %v546_v20 = vpop.f32.mrf.mxu0  ;;  %v566_v25 = vpop.f32.mrf.mxu1 }
 0x1a2   :  { %v586_v26 = vpop.f32.mrf.mxu2  ;;  %v606_v27 = vpop.f32.mrf.mxu3  ;;  %v609_v63 = vadd.f32 %v546_v20, %v520_v48  ;;  %v610_v2 = vadd.f32 %v566_v25, %v521_v53  ;;  %v1006_v20 = vstv %s2894_s0 }
 0x1a3   :  { %v611_v5 = vadd.f32 %v586_v26, %v522_v52  ;;  %v612_v6 = vadd.f32 %v606_v27, %v523_v47 }
 0x1a9   :  { %v635_v32 = vpop.f32.mrf.mxu0  ;;  %v655_v0 = vpop.f32.mrf.mxu1 }
 0x1aa   :  { %v675_v1 = vpop.f32.mrf.mxu2  ;;  %v695_v33 = vpop.f32.mrf.mxu3  ;;  %v698_v7 = vadd.f32 %v635_v32, %v609_v63  ;;  %v699_v8 = vadd.f32 %v655_v0, %v610_v2 }
 0x1ab   :  { %v700_v12 = vadd.f32 %v675_v1, %v611_v5  ;;  %v701_v13 = vadd.f32 %v695_v33, %v612_v6 }
 0x1b1   :  { %v756_v35 = vpop.f32.mrf.mxu0  ;;  %v776_v36 = vpop.f32.mrf.mxu1 }
 0x1b2   :  { %v796_v41 = vpop.f32.mrf.mxu2  ;;  %v816_v44 = vpop.f32.mrf.mxu3  ;;  %v819_v14 = vadd.f32 %v756_v35, %v698_v7  ;;  %v820_v15 = vadd.f32 %v776_v36, %v699_v8 }
 0x1b3   :  { %v821_v16 = vadd.f32 %v796_v41, %v700_v12  ;;  %v822_v17 = vadd.f32 %v816_v44, %v701_v13 }
 0x1b9   :  { %v845_v61 = vpop.f32.mrf.mxu0  ;;  %v865_v62 = vpop.f32.mrf.mxu1 }
 0x1ba   :  { %v885_v24 = vpop.f32.mrf.mxu2  ;;  %v905_v23 = vpop.f32.mrf.mxu3  ;;  %v908_v3 = vadd.f32 %v845_v61, %v819_v14  ;;  %v909_v4 = vadd.f32 %v865_v62, %v820_v15 }
 0x1bb   :  { %v910_v18 = vadd.f32 %v885_v24, %v821_v16  ;;  %v911_v19 = vadd.f32 %v905_v23, %v822_v17 }
 0x1c1   :  { %v934_v34 = vpop.f32.mrf.mxu0  ;;  %v954_v25 = vpop.f32.mrf.mxu1 }
 0x1c2   :  { %v997_v26 = vadd.f32 %v934_v34, %v908_v3  ;;  %v998_v27 = vadd.f32 %v954_v25, %v909_v4  ;;  %v974_v32 = vpop.f32.mrf.mxu2  ;;  %v994_v0 = vpop.f32.mrf.mxu3 }
 0x1c3   :  { %v999_v1 = vadd.f32 %v974_v32, %v910_v18  ;;  %v1000_v33 = vadd.f32 %v994_v0, %v911_v19  ;;  %v1047_v19 = vld [vmem:[%s2895_s7] sm:$0xff] }
 0x1c4   :  { %vm1002_vm0 = vcmp.gt.f32.partialorder %v997_v26, 0.0  ;;  %v1007_v35 = vmul.f32 %v1006_v20, %v997_v26  ;;  %vm1003_vm10 = vcmp.gt.f32.partialorder %v998_v27, 0.0  ;;  %v1008_v36 = vmul.f32 %v1006_v20, %v998_v27 }
 0x1c5   :  { %vm1004_vm14 = vcmp.gt.f32.partialorder %v999_v1, 0.0  ;;  %v1009_v37 = vmul.f32 %v1006_v20, %v999_v1  ;;  %vm1005_vm9 = vcmp.gt.f32.partialorder %v1000_v33, 0.0  ;;  %v1010_v23 = vmul.f32 %v1006_v20, %v1000_v33 }
 0x1c6   :  { %v2585_v24 = vsel %vm1002_vm0, %v997_v26, %v1007_v35  ;;  %v2587_v40 = vsel %vm1003_vm10, %v998_v27, %v1008_v36  ;;  %vm2998_vm0 = vmmov %vm2996_vm2 }
 0x1c7   :  { %v2589_v41 = vsel %vm1004_vm14, %v999_v1, %v1009_v37  ;;  %v2591_v44 = vsel %vm1005_vm9, %v1000_v33, %v1010_v23  ;;  %v2119_v49 = vpack.i.bf16 %v2587_v40, %v2585_v24  ;;  %vm2999_vm10 = vmmov %vm2994_vm5  ;;  %v1085_v37 = vld [vmem:[%s2896_s6] sm:$0xff] }
 0x1c8   :  { %v2114_v54 = vpack.i.bf16 %v2591_v44, %v2589_v41  ;;  %vm3000_vm14 = vmmov %vm2994_vm5 }
 0x1c9   :  { %2120 = vrot.lane.b32.xlu1 %v2119_v49, %s2164_s9  ;;  %2110 = vrot.lane.b32.xlu2 %v2119_v49, %s2165_s10  ;;  %vm3001_vm9 = vmmov %vm2994_vm5 }
 0x1ca   :  { %2115 = vrot.lane.b32.xlu0 %v2114_v54, %s2165_s10 }
 0x1d1   :  { %2125 = vrot.lane.b32.xlu2 %v2114_v54, %s2164_s9 }
 0x223   :  { %v2111_v55 = vpop.permute.xlu2 %2110 }
 0x224   :  { %v2113_v57 = vunpack.i.h.bf16 %v2111_v55  ;;  %v2112_v58 = vunpack.i.l.bf16 %v2111_v55 }
 0x226   :  { %v1025_v52 = vsel %vm2994_vm5, %v2112_v58, %v2113_v57  ;;  %vm3002_vm5 = vnez %v2917_v21  ;;  %v2144_v21 = vpack.i.bf16 %v2589_v41, %v2585_v24 }
 0x22b   :  { %v2126_v56 = vpop.permute.xlu2 %2125 }
 0x22c   :  { %v2128_v59 = vunpack.i.h.bf16 %v2126_v56  ;;  %v2127_v60 = vunpack.i.l.bf16 %v2126_v56 }
 0x22e   :  { %v1035_v62 = vsel %vm2995_vm3, %v2127_v60, %v2128_v59  ;;  %vm3003_vm3 = vnez %v2919_v22  ;;  %v2139_v22 = vpack.i.bf16 %v2589_v41, %v2587_v40 }
 0x23b   :  { %v2121_v38 = vpop.permute.xlu1 %2120 }
 0x23c   :  { %v2116_v39 = vpop.permute.xlu0 %2115  ;;  %v2123_v48 = vunpack.i.h.bf16 %v2121_v38  ;;  %v2122_v53 = vunpack.i.l.bf16 %v2121_v38 }
 0x23d   :  { %v2118_v47 = vunpack.i.h.bf16 %v2116_v39  ;;  %v2117_v61 = vunpack.i.l.bf16 %v2116_v39 }
 0x23e   :  { %v1036_v63 = vsel %vm2996_vm2, %v2123_v48, %v2127_v60  ;;  %v1037_v2 = vsel %vm2997_vm8, %v2122_v53, %v2123_v48  ;;  %v1038_v5 = vsel %vm2998_vm0, %v2128_v59, %v2122_v53  ;;  %vm3004_vm2 = vnez %v2923_v29 }
 0x23f   :  { %v1024_v6 = vsel %vm2999_vm10, %v2113_v57, %v2117_v61  ;;  %v1026_v7 = vsel %vm3000_vm14, %v2118_v47, %v2112_v58  ;;  %v1023_v8 = vsel %vm3001_vm9, %v2117_v61, %v2118_v47  ;;  %v2619_v12 = vsel %vm2259_vm4, %v1036_v63, %v1025_v52  ;;  %v3022_v61 = vld [vmem:[#allocation4_spill] sm:$0xff] }
 0x240   :  { %v2623_v13 = vsel %vm3002_vm5, %v1038_v5, %v1023_v8  ;;  %v2627_v14 = vsel %vm3003_vm3, %v1037_v2, %v1026_v7  ;;  %v2631_v15 = vsel %vm3004_vm2, %v1035_v62, %v1024_v6  ;;  %vm3005_vm4 = vnez %v2929_v50 }
 0x241   :  { %1059 = vrot.lane.b32.xlu1 %v2623_v13, %s2167_s17  ;;  %v2134_v28 = vpack.i.bf16 %v2631_v15, %v2627_v14  ;;  %v2129_v16 = vpack.i.bf16 %v2631_v15, %v2619_v12  ;;  %v2663_v29 = vsel %vm3005_vm4, %v1026_v7, %v1037_v2  ;;  %vm3006_vm8 = vnez %v2927_v46 }
 0x242   :  { %v2667_v17 = vsel %vm3006_vm8, %v1024_v6, %v1035_v62  ;;  %vm3007_vm0 = vnez %v2925_v45  ;;  %vm3008_vm10 = vnez %v2931_v51  ;;  %vm3009_vm14 = vcmp.lt.s32.totalorder %v2245_v10, 112 }
 0x243   :  { %2135 = vrot.lane.b32.xlu2 %v2134_v28, %s2166_s1  ;;  %2130 = vrot.lane.b32.xlu0 %v2129_v16, %s2167_s17  ;;  %v2671_v3 = vsel %vm3007_vm0, %v1025_v52, %v1036_v63  ;;  %v2675_v4 = vsel %vm3008_vm10, %v1023_v8, %v1038_v5  ;;  %v2154_v50 = vpack.i.bf16 %v2667_v17, %v2663_v29  ;;  %vm3010_vm9 = vmmov %vm3009_vm14  ;;  %vm3011_vm5 = vcmp.lt.s32.totalorder %v2245_v10, 16  ;;  %v2013_v63 = vld [vmem:[%s2896_s6 + $0x18] sm:$0xff]  ;;  %v2018_v16 = vld [vmem:[%s2896_s6 + $0x30] sm:$0xff] }
 0x244   :  { %v2149_v18 = vpack.i.bf16 %v2667_v17, %v2671_v3  ;;  %vm3012_vm3 = vmmov %vm3011_vm5  ;;  %vm3017_vm10 = vcmask 64512  }
 0x245   :  { %vm3013_vm2 = vmmov %vm3012_vm3 }
 0x246   :  { %vm3014_vm4 = vmmov %vm3010_vm9 }
 0x247   :  { %vm3015_vm8 = vmmov %vm3014_vm4 }
 0x248   :  { %vm3016_vm0 = vmmov %vm3013_vm2 }
 0x249   :  { %1053 = vrot.lane.b32.xlu1 %v2627_v14, %s2167_s17 }
 0x24b   :  { %1067 = vrot.lane.b32.xlu2 %v2619_v12, %s2166_s1  ;;  %1071 = vrot.lane.b32.xlu0 %v2623_v13, %s2166_s1 }
 0x251   :  { %1357 = vrot.lane.b32.xlu1 %v2591_v44, %s2167_s17 }
 0x253   :  { %2145 = vrot.lane.b32.xlu2 %v2144_v21, %s2166_s1  ;;  %2140 = vrot.lane.b32.xlu0 %v2139_v22, %s2167_s17 }
 0x259   :  { %1351 = vrot.lane.b32.xlu1 %v2585_v24, %s2167_s17 }
 0x25b   :  { %1365 = vrot.lane.b32.xlu2 %v2587_v40, %s2166_s1  ;;  %1369 = vrot.lane.b32.xlu0 %v2591_v44, %s2166_s1 }
 0x261   :  { %1656 = vrot.lane.b32.xlu1 %v2675_v4, %s2167_s17 }
 0x263   :  { %2155 = vrot.lane.b32.xlu2 %v2154_v50, %s2166_s1  ;;  %2150 = vrot.lane.b32.xlu0 %v2149_v18, %s2167_s17 }
 0x269   :  { %1650 = vrot.lane.b32.xlu1 %v2663_v29, %s2167_s17 }
 0x26b   :  { %1664 = vrot.lane.b32.xlu2 %v2671_v3, %s2166_s1  ;;  %1668 = vrot.lane.b32.xlu0 %v2675_v4, %s2166_s1 }
 0x273   :  { %1050 = vperm.xlu0 %2159, %v1047_v19  }
 0x29d   :  { %v2136_v45 = vpop.permute.xlu2 %2135 }
 0x29e   :  { %v2138_v26 = vunpack.i.h.bf16 %v2136_v45  ;;  %v2137_v27 = vunpack.i.l.bf16 %v2136_v45 }
 0x2a5   :  { %v1068_v46 = vpop.permute.xlu2 %1067 }
 0x2a6   :  { %v1074_v1 = vsel %vm3009_vm14, %v1068_v46, %v2138_v26  ;;  %v1075_v33 = vsel %vm3010_vm9, %v2137_v27, %v1068_v46  ;;  %vm3018_vm14 = vmmov %vm3017_vm10 }
 0x2a7   :  { %vm3019_vm9 = vmmov %vm3017_vm10 }
 0x2ad   :  { %v2146_v32 = vpop.permute.xlu2 %2145 }
 0x2ae   :  { %v2148_v7 = vunpack.i.h.bf16 %v2146_v32  ;;  %v2147_v8 = vunpack.i.l.bf16 %v2146_v32 }
 0x2b3   :  { %v1060_v51 = vpop.permute.xlu1 %1059 }
 0x2b5   :  { %v2131_v34 = vpop.permute.xlu0 %2130  ;;  %v1366_v53 = vpop.permute.xlu2 %1365 }
 0x2b6   :  { %v2133_v20 = vunpack.i.h.bf16 %v2131_v34  ;;  %v2132_v25 = vunpack.i.l.bf16 %v2131_v34 }
 0x2b8   :  { %v1062_v55 = vsel %vm3013_vm2, %v2132_v25, %v2133_v20  ;;  %v1061_v58 = vsel %vm3016_vm0, %v2133_v20, %v1060_v51 }
 0x2bb   :  { %v1054_v0 = vpop.permute.xlu1 %1053 }
 0x2bc   :  { %v1063_v35 = vsel %vm3011_vm5, %v1054_v0, %v2132_v25  ;;  %v1064_v36 = vsel %vm3012_vm3, %v1060_v51, %v1054_v0  ;;  %vm3020_vm5 = vmmov %vm3019_vm9  ;;  %vm3023_vm3 = vnez %v3022_v61 }
 0x2bd   :  { %v1072_v23 = vpop.permute.xlu0 %1071  ;;  %v1077_v49 = vsel %vm2418_vm1, %v1075_v33, %v1064_v36  ;;  %v1078_v54 = vsel %vm2422_vm11, %v1074_v1, %v1063_v35  ;;  %v1081_v38 = vsel %vm2438_vm6, %v1064_v36, %v1075_v33  ;;  %v1082_v39 = vsel %vm2442_vm7, %v1063_v35, %v1074_v1  ;;  %vm3024_vm2 = vmmov %vm3020_vm5  ;;  %v2156_v45 = vpop.permute.xlu2 %2155 }
 0x2be   :  { %v1073_v56 = vsel %vm3014_vm4, %v2138_v26, %v1072_v23  ;;  %v1076_v57 = vsel %vm3015_vm8, %v1072_v23, %v2137_v27  ;;  %1104 = vmatpush.msrb.mxu0 %v1077_v49  ;;  %1124 = vmatpush.msrb.mxu1 %v1078_v54  ;;  %vm3025_vm4 = vmmov %vm3024_vm2  ;;  %v2023_v26 = vld [vmem:[%s2896_s6 + $0x8] sm:$0xff] }
 0x2bf   :  { %2009 = vmatmul.msk.f32.vlgmr.msrb.gmra.mxu0 %vm3017_vm10, %v1085_v37  ;;  %2010 = vmatmul.msk.f32.vlgmr.msrb.gmra.mxu1 %vm3018_vm14, %v1085_v37  ;;  %v1079_v59 = vsel %vm2379_vm12, %v1073_v56, %v1062_v55  ;;  %v1080_v60 = vsel %vm2383_vm13, %v1076_v57, %v1061_v58  ;;  %v1083_v47 = vsel %vm2402_vm15, %v1062_v55, %v1073_v56  ;;  %vm3026_vm8 = vmmov %vm3024_vm2  ;;  %vm3028_vm10 = vcmp.lt.s32.totalorder %v2245_v10, 112  ;;  %v2028_v55 = vld [vmem:[%s2896_s6 + $0x20] sm:$0xff] }
 0x2c0   :  { %1193 = vmatpush.msra.mxu0 %v2627_v14  ;;  %1213 = vmatpush.msra.mxu1 %v2619_v12  ;;  %v1084_v62 = vsel %vm3023_vm3, %v1061_v58, %v1076_v57  ;;  %vm3027_vm0 = vmmov %vm3024_vm2 }
 0x2c1   :  { %1144 = vmatpush.msrb.mxu2 %v1079_v59  ;;  %1164 = vmatpush.msrb.mxu3 %v1080_v60  ;;  %vm3029_vm14 = vmmov %vm3028_vm10 }
 0x2c2   :  { %1282 = vmatpush.msrb.mxu0 %v1081_v38  ;;  %1302 = vmatpush.msrb.mxu1 %v1082_v39  ;;  %v1373_v14 = vsel %vm3029_vm14, %v2147_v8, %v1366_v53 }
 0x2c3   :  { %2011 = vmatmul.msk.f32.vlgmr.msrb.gmra.mxu2 %vm3019_vm9, %v1085_v37  ;;  %2012 = vmatmul.msk.f32.vlgmr.msrb.gmra.mxu3 %vm3020_vm5, %v1085_v37  ;;  %v1358_v48 = vpop.permute.xlu1 %1357  ;;  %vm3030_vm9 = vcmp.lt.s32.totalorder %v2245_v10, 16 }
 0x2c4   :  { %1233 = vmatpush.msra.mxu2 %v2631_v15  ;;  %1253 = vmatpush.msra.mxu3 %v2623_v13  ;;  %v1372_v13 = vsel %vm3028_vm10, %v1366_v53, %v2148_v7  ;;  %vm3031_vm5 = vmmov %vm3030_vm9 }
 0x2c5   :  { %v2141_v2 = vpop.permute.xlu0 %2140  ;;  %v1665_v32 = vpop.permute.xlu2 %1664 }
 0x2c6   :  { %1322 = vmatpush.msrb.mxu2 %v1083_v47  ;;  %1342 = vmatpush.msrb.mxu3 %v1084_v62  ;;  %v2143_v5 = vunpack.i.h.bf16 %v2141_v2  ;;  %v2142_v6 = vunpack.i.l.bf16 %v2141_v2 }
 0x2c7   :  { %2014 = vmatmul.msk.f32.vlgmr.msra.gmra.mxu0 %vm3024_vm2, %v2013_v63  ;;  %2015 = vmatmul.msk.f32.vlgmr.msra.gmra.mxu1 %vm3025_vm4, %v2013_v63  ;;  %vm3032_vm2 = vmmov %vm3031_vm5 }
 0x2c8   :  { %v1360_v18 = vsel %vm3032_vm2, %v2142_v6, %v2143_v5  ;;  %vm3033_vm4 = vmmov %vm3028_vm10  ;;  %vm3036_vm10 = vcmask 64512  }
 0x2c9   :  { %vm3037_vm14 = vmmov %vm3036_vm10 }
 0x2cb   :  { %2016 = vmatmul.msk.f32.vlgmr.msra.gmra.mxu2 %vm3026_vm8, %v2013_v63  ;;  %2017 = vmatmul.msk.f32.vlgmr.msra.gmra.mxu3 %vm3027_vm0, %v2013_v63  ;;  %v1352_v12 = vpop.permute.xlu1 %1351  ;;  %vm3034_vm8 = vmmov %vm3033_vm4 }
 0x2cc   :  { %v1361_v15 = vsel %vm3030_vm9, %v1352_v12, %v2142_v6  ;;  %v1362_v28 = vsel %vm3031_vm5, %v1358_v48, %v1352_v12  ;;  %vm3035_vm0 = vmmov %vm3032_vm2 }
 0x2cd   :  { %v1370_v21 = vpop.permute.xlu0 %1369  ;;  %v1375_v22 = vsel %vm2418_vm1, %v1373_v14, %v1362_v28  ;;  %v1376_v50 = vsel %vm2422_vm11, %v1372_v13, %v1361_v15  ;;  %v1359_v19 = vsel %vm3035_vm0, %v2143_v5, %v1358_v48  ;;  %vm3038_vm9 = vmmov %vm3036_vm10  ;;  %v2033_v48 = vld [vmem:[%s2896_s6 + $0x38] sm:$0xff] }
 0x2ce   :  { %v1371_v46 = vsel %vm3033_vm4, %v2148_v7, %v1370_v21  ;;  %v1374_v51 = vsel %vm3034_vm8, %v1370_v21, %v2147_v8  ;;  %1403 = vmatpush.msra.mxu0 %v1375_v22  ;;  %1423 = vmatpush.msra.mxu1 %v1376_v50  ;;  %vm3039_vm5 = vmmov %vm3038_vm9 }
 0x2cf   :  { %2019 = vmatmul.msk.f32.vlgmr.msrb.gmra.mxu0 %vm3036_vm10, %v2018_v16  ;;  %2020 = vmatmul.msk.f32.vlgmr.msrb.gmra.mxu1 %vm3037_vm14, %v2018_v16  ;;  %v1377_v34 = vsel %vm2379_vm12, %v1371_v46, %v1360_v18  ;;  %v1378_v20 = vsel %vm2383_vm13, %v1374_v51, %v1359_v19  ;;  %vm3040_vm2 = vmmov %vm3039_vm5  ;;  %v1381_v33 = vsel %vm2402_vm15, %v1360_v18, %v1371_v46 }
 0x2d0   :  { %1492 = vmatpush.msrb.mxu0 %v2585_v24  ;;  %1512 = vmatpush.msrb.mxu1 %v2587_v40  ;;  %vm3041_vm4 = vmmov %vm3040_vm2  ;;  %v1379_v24 = vsel %vm2438_vm6, %v1362_v28, %v1373_v14  ;;  %v1380_v40 = vsel %vm2442_vm7, %v1361_v15, %v1372_v13  ;;  %v1382_v35 = vsel %vm3023_vm3, %v1359_v19, %v1374_v51 }
 0x2d1   :  { %1443 = vmatpush.msra.mxu2 %v1377_v34  ;;  %1463 = vmatpush.msra.mxu3 %v1378_v20  ;;  %vm3042_vm0 = vmmov %vm3040_vm2 }
 0x2d2   :  { %vm3043_vm10 = vmmov %vm3042_vm0 }
 0x2d3   :  { %2021 = vmatmul.msk.f32.vlgmr.msrb.gmra.mxu2 %vm3038_vm9, %v2018_v16  ;;  %2022 = vmatmul.msk.f32.vlgmr.msrb.gmra.mxu3 %vm3039_vm5, %v2018_v16  ;;  %v1657_v25 = vpop.permute.xlu1 %1656  ;;  %vm3044_vm14 = vmmov %vm3034_vm8  ;;  %vm3045_vm9 = vcmp.lt.s32.totalorder %v2245_v10, 16  ;;  %v2038_v10 = vld [vmem:[%s2896_s6 + $0x10] sm:$0xff] }
 0x2d4   :  { %1532 = vmatpush.msrb.mxu2 %v2589_v41  ;;  %1552 = vmatpush.msrb.mxu3 %v2591_v44  ;;  %v2158_v41 = vunpack.i.h.bf16 %v2156_v45  ;;  %v2157_v44 = vunpack.i.l.bf16 %v2156_v45  ;;  %vm3046_vm5 = vmmov %vm3045_vm9 }
 0x2d5   :  { %v2151_v27 = vpop.permute.xlu0 %2150 }
 0x2d6   :  { %v2152_v0 = vunpack.i.l.bf16 %v2151_v27  ;;  %v1671_v1 = vsel %vm3034_vm8, %v1665_v32, %v2158_v41  ;;  %v1672_v37 = vsel %vm3044_vm14, %v2157_v44, %v1665_v32  ;;  %v2153_v23 = vunpack.i.h.bf16 %v2151_v27  ;;  %vm3053_vm14 = vmmov %vm3042_vm0 }
 0x2d7   :  { %2024 = vmatmul.msk.f32.vlgmr.msra.gmra.mxu0 %vm3040_vm2, %v2023_v26  ;;  %2025 = vmatmul.msk.f32.vlgmr.msra.gmra.mxu1 %vm3041_vm4, %v2023_v26  ;;  %vm3047_vm2 = vmmov %vm3034_vm8 }
 0x2d8   :  { %1581 = vmatpush.msra.mxu0 %v1379_v24  ;;  %1601 = vmatpush.msra.mxu1 %v1380_v40  ;;  %vm3048_vm4 = vmmov %vm3047_vm2 }
 0x2d9   :  { %vm3049_vm8 = vmmov %vm3042_vm0 }
 0x2db   :  { %2026 = vmatmul.msk.f32.vlgmr.msra.gmra.mxu2 %vm3042_vm0, %v2023_v26  ;;  %2027 = vmatmul.msk.f32.vlgmr.msra.gmra.mxu3 %vm3043_vm10, %v2023_v26  ;;  %v1651_v36 = vpop.permute.xlu1 %1650  ;;  %vm3050_vm10 = vmmov %vm3046_vm5 }
 0x2dc   :  { %1621 = vmatpush.msra.mxu2 %v1381_v33  ;;  %1641 = vmatpush.msra.mxu3 %v1382_v35  ;;  %v1660_v49 = vsel %vm3045_vm9, %v1651_v36, %v2152_v0  ;;  %v1661_v54 = vsel %vm3046_vm5, %v1657_v25, %v1651_v36  ;;  %v1659_v38 = vsel %vm3050_vm10, %v2152_v0, %v2153_v23  ;;  %vm3054_vm9 = vmmov %vm3042_vm0 }
 0x2dd   :  { %v1669_v56 = vpop.permute.xlu0 %1668  ;;  %v1674_v57 = vsel %vm2418_vm1, %v1672_v37, %v1661_v54  ;;  %v1675_v58 = vsel %vm2422_vm11, %v1671_v1, %v1660_v49  ;;  %vm3051_vm1 = vmmov %vm3046_vm5  ;;  %v1678_v9 = vsel %vm2438_vm6, %v1661_v54, %v1672_v37  ;;  %v1679_v11 = vsel %vm2442_vm7, %v1660_v49, %v1671_v1 }
 0x2de   :  { %v1670_v59 = vsel %vm3047_vm2, %v2158_v41, %v1669_v56  ;;  %v1673_v60 = vsel %vm3048_vm4, %v1669_v56, %v2157_v44  ;;  %v1658_v30 = vsel %vm3051_vm1, %v2153_v23, %v1657_v25  ;;  %vm3052_vm11 = vmmov %vm3042_vm0 }
 0x2df   :  { %2029 = vmatmul.msk.f32.vlgmr.msrb.gmra.mxu0 %vm3049_vm8, %v2028_v55  ;;  %2030 = vmatmul.msk.f32.vlgmr.msrb.gmra.mxu1 %vm3042_vm0, %v2028_v55  ;;  %v1676_v31 = vsel %vm2379_vm12, %v1670_v59, %v1659_v38  ;;  %v1677_v39 = vsel %vm2383_vm13, %v1673_v60, %v1658_v30  ;;  %vm3055_vm5 = vmmov %vm3042_vm0 }
 0x2e0   :  { %1702 = vmatpush.msrb.mxu0 %v1674_v57  ;;  %1722 = vmatpush.msrb.mxu1 %v1675_v58  ;;  %vm3056_vm12 = vmmov %vm3042_vm0 }
 0x2e1   :  { %vm3057_vm13 = vmmov %vm3042_vm0 }
 0x2e2   :  { %vm3058_vm2 = vmmov %vm3042_vm0 }
 0x2e3   :  { %2031 = vmatmul.msk.f32.vlgmr.msrb.gmra.mxu2 %vm3052_vm11, %v2028_v55  ;;  %2032 = vmatmul.msk.f32.vlgmr.msrb.gmra.mxu3 %vm3053_vm14, %v2028_v55  ;;  %vm3059_vm4 = vmmov %vm3042_vm0 }
 0x2e4   :  { %1742 = vmatpush.msrb.mxu2 %v1676_v31  ;;  %1762 = vmatpush.msrb.mxu3 %v1677_v39  ;;  %vm3060_vm8 = vmmov %vm3042_vm0 }
 0x2e5   :  { %vm3061_vm6 = vmmov %vm3042_vm0  ;;  %v1051_v18 = vpop.permute.xlu0 %1050 }
 0x2e6   :  { %vm3062_vm7 = vmmov %vm3042_vm0 }
 0x2e7   :  { %2034 = vmatmul.msk.f32.vlgmr.msra.gmra.mxu0 %vm3054_vm9, %v2033_v48  ;;  %2035 = vmatmul.msk.f32.vlgmr.msra.gmra.mxu1 %vm3055_vm5, %v2033_v48  ;;  %vm3063_vm10 = vmmov %vm3042_vm0 }
 0x2e8   :  { %1791 = vmatpush.msra.mxu0 %v2663_v29  ;;  %1811 = vmatpush.msra.mxu1 %v2671_v3  ;;  %v1680_v29 = vsel %vm2402_vm15, %v1659_v38, %v1670_v59  ;;  %vm3064_vm1 = vmmov %vm3042_vm0 }
 0x2e9   :  { %vm3065_vm15 = vmmov %vm3042_vm0 }
 0x2ea   :  { %vm3067_vm11 = vmmov %vm3042_vm0 }
 0x2eb   :  { %2036 = vmatmul.msk.f32.vlgmr.msra.gmra.mxu2 %vm3056_vm12, %v2033_v48  ;;  %2037 = vmatmul.msk.f32.vlgmr.msra.gmra.mxu3 %vm3057_vm13, %v2033_v48  ;;  %vm3068_vm14 = vmmov %vm3042_vm0 }
 0x2ec   :  { %1831 = vmatpush.msra.mxu2 %v2667_v17  ;;  %1851 = vmatpush.msra.mxu3 %v2675_v4  ;;  %v1681_v17 = vsel %vm3023_vm3, %v1658_v30, %v1673_v60  ;;  %vm3066_vm3 = vmmov %vm3042_vm0 }
 0x2ef   :  { %2039 = vmatmul.msk.f32.vlgmr.msrb.gmra.mxu0 %vm3058_vm2, %v2038_v10  ;;  %2040 = vmatmul.msk.f32.vlgmr.msrb.gmra.mxu1 %vm3059_vm4, %v2038_v10 }
 0x2f0   :  { %1880 = vmatpush.msrb.mxu0 %v1678_v9  ;;  %1900 = vmatpush.msrb.mxu1 %v1679_v11 }
 0x2f3   :  { %2041 = vmatmul.msk.f32.vlgmr.msrb.gmra.mxu2 %vm3060_vm8, %v2038_v10  ;;  %2042 = vmatmul.msk.f32.vlgmr.msrb.gmra.mxu3 %vm3042_vm0, %v2038_v10 }
 0x2f4   :  { %1920 = vmatpush.msrb.mxu2 %v1680_v29  ;;  %1940 = vmatpush.msrb.mxu3 %v1681_v17 }
 0x2f7   :  { %2044 = vmatmul.msk.f32.vlgmr.msra.gmra.mxu0 %vm3061_vm6, %v2043_v42  ;;  %2045 = vmatmul.msk.f32.vlgmr.msra.gmra.mxu1 %vm3062_vm7, %v2043_v42 }
 0x2fb   :  { %2046 = vmatmul.msk.f32.vlgmr.msra.gmra.mxu2 %vm3063_vm10, %v2043_v42  ;;  %2047 = vmatmul.msk.f32.vlgmr.msra.gmra.mxu3 %vm3064_vm1, %v2043_v42 }
 0x2ff   :  { %2049 = vmatmul.msk.f32.vlgmr.msrb.gmra.mxu0 %vm3065_vm15, %v2048_v43  ;;  %2050 = vmatmul.msk.f32.vlgmr.msrb.gmra.mxu1 %vm3066_vm3, %v2048_v43 }
 0x303   :  { %2051 = vmatmul.msk.f32.vlgmr.msrb.gmra.mxu2 %vm3067_vm11, %v2048_v43  ;;  %2052 = vmatmul.msk.f32.vlgmr.msrb.gmra.mxu3 %vm3068_vm14, %v2048_v43 }
 0x33c   :  { %v1106_v3 = vpop.f32.mrf.mxu0  ;;  %v1126_v4 = vpop.f32.mrf.mxu1 }
 0x33d   :  { %v1169_v45 = vadd.f32 %v1106_v3, %v1051_v18  ;;  %v1170_v46 = vadd.f32 %v1126_v4, %v1051_v18 }
 0x344   :  { %v1195_v53 = vpop.f32.mrf.mxu0  ;;  %v1215_v52 = vpop.f32.mrf.mxu1 }
 0x345   :  { %v1258_v25 = vadd.f32 %v1195_v53, %v1169_v45  ;;  %v1259_v26 = vadd.f32 %v1215_v52, %v1170_v46  ;;  %v2160_v52 = vld [vmem:[%s2889_s3] sm:$0xff] }
 0x346   :  { %v1146_v47 = vpop.f32.mrf.mxu2  ;;  %v1166_v61 = vpop.f32.mrf.mxu3 }
 0x347   :  { %v1171_v36 = vadd.f32 %v1146_v47, %v1051_v18  ;;  %v1172_v37 = vadd.f32 %v1166_v61, %v1051_v18  ;;  %v2161_v61 = vld [vmem:[%s2889_s3 + $0x8] sm:$0xff] }
 0x34c   :  { %v1284_v62 = vpop.f32.mrf.mxu0  ;;  %v1304_v63 = vpop.f32.mrf.mxu1 }
 0x34d   :  { %v1347_v27 = vadd.f32 %v1284_v62, %v1258_v25  ;;  %v1348_v24 = vadd.f32 %v1304_v63, %v1259_v26 }
 0x34e   :  { %v1235_v2 = vpop.f32.mrf.mxu2  ;;  %v1255_v5 = vpop.f32.mrf.mxu3 }
 0x34f   :  { %v1260_v54 = vadd.f32 %v1235_v2, %v1171_v36  ;;  %v1261_v55 = vadd.f32 %v1255_v5, %v1172_v37 }
 0x354   :  { %v1405_v6 = vpop.f32.mrf.mxu0  ;;  %v1425_v7 = vpop.f32.mrf.mxu1 }
 0x355   :  { %v1468_v40 = vadd.f32 %v1405_v6, %v1347_v27  ;;  %v1469_v32 = vadd.f32 %v1425_v7, %v1348_v24 }
 0x356   :  { %v1324_v8 = vpop.f32.mrf.mxu2  ;;  %v1344_v12 = vpop.f32.mrf.mxu3 }
 0x357   :  { %v1349_v58 = vadd.f32 %v1324_v8, %v1260_v54  ;;  %v1350_v59 = vadd.f32 %v1344_v12, %v1261_v55 }
 0x35c   :  { %v1494_v13 = vpop.f32.mrf.mxu0  ;;  %v1514_v14 = vpop.f32.mrf.mxu1 }
 0x35d   :  { %v1557_v0 = vadd.f32 %v1494_v13, %v1468_v40  ;;  %v1558_v1 = vadd.f32 %v1514_v14, %v1469_v32 }
 0x35e   :  { %v1445_v15 = vpop.f32.mrf.mxu2  ;;  %v1465_v28 = vpop.f32.mrf.mxu3 }
 0x35f   :  { %v1470_v39 = vadd.f32 %v1445_v15, %v1349_v58  ;;  %v1471_v48 = vadd.f32 %v1465_v28, %v1350_v59  ;;  %v2162_v28 = vld [vmem:[%s2889_s3 + $0x10] sm:$0xff] }
 0x364   :  { %v1583_v16 = vpop.f32.mrf.mxu0  ;;  %v1603_v21 = vpop.f32.mrf.mxu1 }
 0x365   :  { %v1646_v23 = vadd.f32 %v1583_v16, %v1557_v0  ;;  %v1647_v49 = vadd.f32 %v1603_v21, %v1558_v1  ;;  %v2163_v21 = vld [vmem:[%s2889_s3 + $0x18] sm:$0xff] }
 0x366   :  { %v1534_v22 = vpop.f32.mrf.mxu2  ;;  %v1554_v50 = vpop.f32.mrf.mxu3 }
 0x367   :  { %v1559_v17 = vadd.f32 %v1534_v22, %v1470_v39  ;;  %v1560_v42 = vadd.f32 %v1554_v50, %v1471_v48 }
 0x36c   :  { %v1704_v51 = vpop.f32.mrf.mxu0  ;;  %v1724_v19 = vpop.f32.mrf.mxu1 }
 0x36d   :  { %v1767_v56 = vadd.f32 %v1704_v51, %v1646_v23  ;;  %v1768_v57 = vadd.f32 %v1724_v19, %v1647_v49 }
 0x36e   :  { %v1623_v34 = vpop.f32.mrf.mxu2  ;;  %v1643_v20 = vpop.f32.mrf.mxu3 }
 0x36f   :  { %v1648_v4 = vadd.f32 %v1623_v34, %v1559_v17  ;;  %v1649_v53 = vadd.f32 %v1643_v20, %v1560_v42 }
 0x374   :  { %v1793_v41 = vpop.f32.mrf.mxu0  ;;  %v1813_v44 = vpop.f32.mrf.mxu1 }
 0x375   :  { %v1856_v60 = vadd.f32 %v1793_v41, %v1767_v56  ;;  %v1857_v38 = vadd.f32 %v1813_v44, %v1768_v57 }
 0x376   :  { %v1744_v33 = vpop.f32.mrf.mxu2  ;;  %v1764_v35 = vpop.f32.mrf.mxu3 }
 0x377   :  { %v1769_v63 = vadd.f32 %v1744_v33, %v1648_v4  ;;  %v1770_v2 = vadd.f32 %v1764_v35, %v1649_v53 }
 0x37c   :  { %v1882_v30 = vpop.f32.mrf.mxu0  ;;  %v1902_v31 = vpop.f32.mrf.mxu1 }
 0x37d   :  { %v1945_v10 = vadd.f32 %v1882_v30, %v1856_v60  ;;  %v1946_v9 = vadd.f32 %v1902_v31, %v1857_v38 }
 0x37e   :  { %v1833_v11 = vpop.f32.mrf.mxu2  ;;  %v1853_v29 = vpop.f32.mrf.mxu3 }
 0x37f   :  { %v1949_v43 = vmul.f32 0.1, %v1945_v10  ;;  %v1950_v3 = vmul.f32 0.1, %v1946_v9  ;;  %v1858_v5 = vadd.f32 %v1833_v11, %v1769_v63  ;;  %v1859_v6 = vadd.f32 %v1853_v29, %v1770_v2 }
 0x381   :  { %v1953_v47 = vadd.f32 %v2160_v52, %v1949_v43  ;;  %v1954_v62 = vadd.f32 %v2161_v61, %v1950_v3 }
 0x383   :  { %1957 = vst [vmem:[%s2897_s8] sm:$0xff] %v1953_v47 }
 0x384   :  { %1958 = vst [vmem:[%s2897_s8 + $0x8] sm:$0xff] %v1954_v62 }
 0x386   :  { %v1922_v7 = vpop.f32.mrf.mxu2  ;;  %v1942_v8 = vpop.f32.mrf.mxu3 }
 0x387   :  { %v1947_v12 = vadd.f32 %v1922_v7, %v1858_v5  ;;  %v1948_v13 = vadd.f32 %v1942_v8, %v1859_v6 }
 0x389   :  { %v1951_v14 = vmul.f32 0.1, %v1947_v12  ;;  %v1952_v15 = vmul.f32 0.1, %v1948_v13 }
 0x38b   :  { %v1955_v16 = vadd.f32 %v2162_v28, %v1951_v14  ;;  %v1956_v22 = vadd.f32 %v2163_v21, %v1952_v15 }
 0x38d   :  { %1959 = vst [vmem:[%s2897_s8 + $0x10] sm:$0xff] %v1955_v16 }
 0x38e   :  { %1960 = vst [vmem:[%s2897_s8 + $0x18] sm:$0xff] %v1956_v22 }

</bundles_post_ra>
